<compile_context>
chip_gen: v5e
topology: v5e:2x2
jax: 0.10.0
libtpu: 0.0.40
codegen_flags: <defaults>
</compile_context>

<pallas_src>
import math

import jax
import jax.numpy as jnp
from jax.experimental import pallas as pl
from jax.experimental.pallas import tpu as pltpu


def gnnq_kernel(adj_ref, x_ref, w1_ref, w2_ref, w3_ref, out_ref):
    """Fused 3-layer GCN forward for a block of Bb graphs (eval mode).

    Shared-weight feature transforms run as one (Bb*N, K) @ (K, M) MXU matmul;
    adjacency aggregation runs as a batched einsum over the Bb graphs. All
    matmuls take bf16 operands and accumulate in f32 on the MXU; ReLU is done
    in f32 before re-quantizing to bf16.
    """
    adj = adj_ref[...]                        # (Bb, N, N) bf16
    Bb, N, _ = adj.shape

    def gcn_layer(h_bf, w_ref, relu):
        k = h_bf.shape[-1]
        m = w_ref.shape[-1]
        # Feature transform: single big MXU call (weights shared across graphs).
        hw = jnp.dot(h_bf.reshape(Bb * N, k), w_ref[...],
                     preferred_element_type=jnp.float32)
        hw = hw.reshape(Bb, N, m).astype(jnp.bfloat16)
        # Neighborhood aggregation: per-graph adj @ (h W), batched over graphs.
        ag = jnp.einsum("bij,bjm->bim", adj, hw,
                        preferred_element_type=jnp.float32)
        if relu:
            ag = jnp.maximum(ag, 0.0)         # f32 ReLU (v5e: no bf16 VALU)
        return ag.astype(jnp.bfloat16)

    h = gcn_layer(x_ref[...], w1_ref, relu=True)    # m1 + ReLU
    h = gcn_layer(h, w2_ref, relu=True)             # m3 + ReLU
    h = gcn_layer(h, w3_ref, relu=False)            # m2 (zero-padded classes)
    out_ref[...] = h                                 # lane-dense bf16 (Bb, N, Cp)


def _tensorcores_per_chip():
    """Best-effort TensorCore-per-chip count (v4/v5p megacore, v7x -> 2)."""
    try:
        kind = jax.devices()[0].device_kind.lower()
    except Exception:
        return 1
    if "v4" in kind or "v5p" in kind or "7" in kind:
        return 2
    return 1


def _vmem_limit_bytes(Bb, N, F_in, H, Cp):
    bf2, f4 = 2, 4
    # Double-buffered pipeline blocks (inputs + output), per grid step.
    io = 2 * ((Bb * N * N + Bb * N * F_in + Bb * N * Cp) * bf2
              + (F_in * H + H * H + H * Cp) * bf2)
    # Fused-body f32 intermediates (a few (Bb*N, max(H, Cp)) temporaries).
    temps = 4 * Bb * N * max(H, Cp) * f4
    want = io + temps + (2 << 20)             # Mosaic internal-scratch headroom
    try:
        cap = int(pltpu.get_tpu_info().vmem_capacity_bytes)
    except Exception:
        cap = 64 << 20                        # v7x floor
    return int(min(max(want, 4 << 20), 0.85 * cap))


def prepare_gnnq_weights(w1, w2, w3, lane=128):
    """One-time weight prep (hoisted out of the per-call path):
    bf16 cast + zero-pad of w3 columns to a lane-dense multiple of 128."""
    bf = jnp.bfloat16
    H, C = w3.shape
    Cp = pl.cdiv(C, lane) * lane
    w3_p = jnp.zeros((H, Cp), dtype=bf).at[:, :C].set(w3.astype(bf))
    return w1.astype(bf), w2.astype(bf), w3_p


def gnnq_forward(adj, x, w1_b, w2_b, w3_b):
    """Eval-mode GNNq forward.

    Expects bf16 adj/x (keep them bf16 upstream to avoid an extra HBM cast
    pass) and weights from prepare_gnnq_weights. Returns the lane-dense padded
    logits [B, N, Cp] in bf16; the consumer slices/fuses [:, :, :num_class].
    """
    if adj.dtype != jnp.bfloat16:
        adj = adj.astype(jnp.bfloat16)        # fallback; prefer bf16 upstream
    if x.dtype != jnp.bfloat16:
        x = x.astype(jnp.bfloat16)

    B, N, _ = adj.shape
    F_in = x.shape[-1]
    H = w1_b.shape[1]
    Cp = w3_b.shape[1]

    tc = _tensorcores_per_chip()
    steps = tc if (tc > 1 and B % tc == 0) else 1   # 2 parallel steps on dual-TC chips
    Bb = B // steps

    return pl.pallas_call(
        gnnq_kernel,
        out_shape=jax.ShapeDtypeStruct((B, N, Cp), jnp.bfloat16),
        grid=(steps,),
        in_specs=[
            pl.BlockSpec((Bb, N, N), lambda b: (b, 0, 0)),      # adj  (per-block)
            pl.BlockSpec((Bb, N, F_in), lambda b: (b, 0, 0)),   # x    (per-block)
            pl.BlockSpec((F_in, H), lambda b: (0, 0)),          # w1   (shared, resident)
            pl.BlockSpec((H, H), lambda b: (0, 0)),             # w2   (shared, resident)
            pl.BlockSpec((H, Cp), lambda b: (0, 0)),            # w3   (shared, padded)
        ],
        out_specs=pl.BlockSpec((Bb, N, Cp), lambda b: (b, 0, 0)),
        compiler_params=pltpu.CompilerParams(
            dimension_semantics=("parallel",),
            vmem_limit_bytes=_vmem_limit_bytes(Bb, N, F_in, H, Cp),
        ),
    )(adj, x, w1_b, w2_b, w3_b)


def reference_forward_bf16(adj, x, w1, w2, w3):
    """Mirrors kernel numerics: bf16 operands, f32 accumulation, bf16 requant."""
    bf, f32 = jnp.bfloat16, jnp.float32
    adj_b = adj.astype(bf)

    def layer(h, w, relu):
        hw = jnp.einsum("bnk,km->bnm", h.astype(bf), w.astype(bf),
                        preferred_element_type=f32).astype(bf)
        ag = jnp.einsum("bij,bjm->bim", adj_b, hw, preferred_element_type=f32)
        if relu:
            ag = jnp.maximum(ag, 0.0)
        return ag.astype(bf)

    h = layer(x, w1, True)
    h = layer(h, w2, True)
    return layer(h, w3, False)


def reference_forward_f32(adj, x, w1, w2, w3):
    h = jnp.maximum(jnp.einsum("bij,bjm->bim", adj, jnp.einsum("bnk,km->bnm", x, w1)), 0.0)
    h = jnp.maximum(jnp.einsum("bij,bjm->bim", adj, jnp.einsum("bnk,km->bnm", h, w2)), 0.0)
    return jnp.einsum("bij,bjm->bim", adj, jnp.einsum("bnk,km->bnm", h, w3))


def init_weight(key, fan_in, fan_out):
    # GraphConvolution.reset_parameters(): uniform(-stdv, stdv), stdv = 1/sqrt(out).
    stdv = 1.0 / math.sqrt(fan_out)
    return jax.random.uniform(
        key, (fan_in, fan_out), dtype=jnp.float32, minval=-stdv, maxval=stdv
    )


if __name__ == "__main__":
    # opt = {'num_feature': 32, 'hidden_dim': 32, 'num_class': 8}, N = 64 nodes,
    # batched over B = 4 graphs (folds into 1 or 2 grid steps depending on chip).
    B, N, F_in, H, C = 4, 64, 32, 32, 8

    key = jax.random.PRNGKey(0)
    k_x, k_adj, k1, k2, k3 = jax.random.split(key, 5)

    # Node features.
    x = jax.random.normal(k_x, (B, N, F_in), dtype=jnp.float32)

    # Dense "normalized adjacency": random sparse pattern + self loops,
    # row-normalized per graph (stand-in for the precomputed adj passed to GNNq).
    a = (jax.random.uniform(k_adj, (B, N, N)) < 0.1).astype(jnp.float32)
    a = a + jnp.eye(N, dtype=jnp.float32)[None, :, :]
    adj = a / jnp.sum(a, axis=2, keepdims=True)

    w1 = init_weight(k1, F_in, H)
    w2 = init_weight(k2, H, H)
    w3 = init_weight(k3, H, C)

    # One-time prep hoisted out of the per-call path: upstream bf16 inputs and
    # prepared (bf16, padded) weights.
    adj_b = adj.astype(jnp.bfloat16)
    x_b = x.astype(jnp.bfloat16)
    w1_b, w2_b, w3_b = prepare_gnnq_weights(w1, w2, w3)

    out_padded = gnnq_forward(adj_b, x_b, w1_b, w2_b, w3_b)
    out_padded = jax.block_until_ready(out_padded)
    assert out_padded.shape == (B, N, w3_b.shape[1])
    assert out_padded.dtype == jnp.bfloat16

    # Padded class columns are exactly zero (w3 pad is zero, adj @ 0 = 0).
    assert bool(jnp.all(out_padded[:, :, C:] == 0))

    # Consumer-side slice (outside the kernel path).
    out = out_padded[:, :, :C].astype(jnp.float32)

    # Strict check vs. a bf16-matched reference (same numerics as the kernel).
    ref_bf16 = reference_forward_bf16(adj, x, w1, w2, w3).astype(jnp.float32)
    assert jnp.allclose(out, ref_bf16, atol=1e-2, rtol=1e-2)

    # Loose sanity check vs. full-f32 reference (bf16 rounding tolerance).
    ref_f32 = reference_forward_f32(adj, x, w1, w2, w3)
    assert jnp.allclose(out, ref_f32, atol=5e-2, rtol=5e-2)

    print("KERNEL_OK")
</pallas_src>

<mosaic_0001>
module attributes {stable_mosaic.version = 11 : i64} {
  func.func @gnnq_kernel(%arg0: i32, %arg1: memref<4x64x64xbf16, #tpu.memory_space<vmem>>, %arg2: memref<4x64x32xbf16, #tpu.memory_space<vmem>>, %arg3: memref<32x32xbf16, #tpu.memory_space<vmem>>, %arg4: memref<32x32xbf16, #tpu.memory_space<vmem>>, %arg5: memref<32x128xbf16, #tpu.memory_space<vmem>>, %arg6: memref<4x64x128xbf16, #tpu.memory_space<vmem>>) attributes {dimension_semantics = [#tpu.dimension_semantics<parallel>], iteration_bounds = array<i64: 1>, scalar_prefetch = 0 : i64, scratch_operands = 0 : i64, tpu.core_type = #tpu.core_type<tc>, window_params = [{transform_indices = @transform_0, window_bounds = array<i64: 4, 64, 64>}, {transform_indices = @transform_1, window_bounds = array<i64: 4, 64, 32>}, {pipeline_mode = #tpu.pipeline_mode<synchronous>, transform_indices = @transform_2, window_bounds = array<i64: 32, 32>}, {pipeline_mode = #tpu.pipeline_mode<synchronous>, transform_indices = @transform_3, window_bounds = array<i64: 32, 32>}, {pipeline_mode = #tpu.pipeline_mode<synchronous>, transform_indices = @transform_4, window_bounds = array<i64: 32, 128>}, {transform_indices = @transform_5, window_bounds = array<i64: 4, 64, 128>}]} {
    %c0 = arith.constant 0 : index
    %c0_0 = arith.constant 0 : index
    %c0_1 = arith.constant 0 : index
    %0 = vector.load %arg1[%c0, %c0_0, %c0_1] : memref<4x64x64xbf16, #tpu.memory_space<vmem>>, vector<4x64x64xbf16>
    %c0_2 = arith.constant 0 : index
    %c0_3 = arith.constant 0 : index
    %c0_4 = arith.constant 0 : index
    %1 = vector.load %arg2[%c0_2, %c0_3, %c0_4] : memref<4x64x32xbf16, #tpu.memory_space<vmem>>, vector<4x64x32xbf16>
    %2 = vector.shape_cast %1 : vector<4x64x32xbf16> to vector<256x32xbf16>
    %c0_5 = arith.constant 0 : index
    %c0_6 = arith.constant 0 : index
    %3 = vector.load %arg3[%c0_5, %c0_6] : memref<32x32xbf16, #tpu.memory_space<vmem>>, vector<32x32xbf16>
    %cst = arith.constant dense<0.000000e+00> : vector<256x32xf32>
    %4 = tpu.matmul %2, %3, %cst {dimension_numbers = #tpu.dot_dimension_numbers<[1], [0], [0], [1], [0, 0, 1, 1], [], []>} : vector<256x32xbf16>, vector<32x32xbf16>, vector<256x32xf32> -> vector<256x32xf32>
    %5 = vector.shape_cast %4 : vector<256x32xf32> to vector<4x64x32xf32>
    %6 = arith.truncf %5 : vector<4x64x32xf32> to vector<4x64x32xbf16>
    "tpu.trace_start"() <{level = 10 : i32, message = "bij,bjm->bim"}> : () -> ()
    %cst_7 = arith.constant dense<0.000000e+00> : vector<4x64x32xf32>
    %7 = tpu.matmul %0, %6, %cst_7 {dimension_numbers = #tpu.dot_dimension_numbers<[2], [1], [1], [2], [0, 0, 0, 1, 1, 2], [0], [0]>} : vector<4x64x64xbf16>, vector<4x64x32xbf16>, vector<4x64x32xf32> -> vector<4x64x32xf32>
    "tpu.trace_stop"() : () -> ()
    %cst_8 = arith.constant 0.000000e+00 : f32
    %8 = vector.broadcast %cst_8 : f32 to vector<4x64x32xf32>
    %9 = arith.maximumf %7, %8 : vector<4x64x32xf32>
    %10 = arith.truncf %9 : vector<4x64x32xf32> to vector<4x64x32xbf16>
    %11 = vector.shape_cast %10 : vector<4x64x32xbf16> to vector<256x32xbf16>
    %c0_9 = arith.constant 0 : index
    %c0_10 = arith.constant 0 : index
    %12 = vector.load %arg4[%c0_9, %c0_10] : memref<32x32xbf16, #tpu.memory_space<vmem>>, vector<32x32xbf16>
    %cst_11 = arith.constant dense<0.000000e+00> : vector<256x32xf32>
    %13 = tpu.matmul %11, %12, %cst_11 {dimension_numbers = #tpu.dot_dimension_numbers<[1], [0], [0], [1], [0, 0, 1, 1], [], []>} : vector<256x32xbf16>, vector<32x32xbf16>, vector<256x32xf32> -> vector<256x32xf32>
    %14 = vector.shape_cast %13 : vector<256x32xf32> to vector<4x64x32xf32>
    %15 = arith.truncf %14 : vector<4x64x32xf32> to vector<4x64x32xbf16>
    "tpu.trace_start"() <{level = 10 : i32, message = "bij,bjm->bim"}> : () -> ()
    %cst_12 = arith.constant dense<0.000000e+00> : vector<4x64x32xf32>
    %16 = tpu.matmul %0, %15, %cst_12 {dimension_numbers = #tpu.dot_dimension_numbers<[2], [1], [1], [2], [0, 0, 0, 1, 1, 2], [0], [0]>} : vector<4x64x64xbf16>, vector<4x64x32xbf16>, vector<4x64x32xf32> -> vector<4x64x32xf32>
    "tpu.trace_stop"() : () -> ()
    %cst_13 = arith.constant 0.000000e+00 : f32
    %17 = vector.broadcast %cst_13 : f32 to vector<4x64x32xf32>
    %18 = arith.maximumf %16, %17 : vector<4x64x32xf32>
    %19 = arith.truncf %18 : vector<4x64x32xf32> to vector<4x64x32xbf16>
    %20 = vector.shape_cast %19 : vector<4x64x32xbf16> to vector<256x32xbf16>
    %c0_14 = arith.constant 0 : index
    %c0_15 = arith.constant 0 : index
    %21 = vector.load %arg5[%c0_14, %c0_15] : memref<32x128xbf16, #tpu.memory_space<vmem>>, vector<32x128xbf16>
    %cst_16 = arith.constant dense<0.000000e+00> : vector<256x128xf32>
    %22 = tpu.matmul %20, %21, %cst_16 {dimension_numbers = #tpu.dot_dimension_numbers<[1], [0], [0], [1], [0, 0, 1, 1], [], []>} : vector<256x32xbf16>, vector<32x128xbf16>, vector<256x128xf32> -> vector<256x128xf32>
    %23 = vector.shape_cast %22 : vector<256x128xf32> to vector<4x64x128xf32>
    %24 = arith.truncf %23 : vector<4x64x128xf32> to vector<4x64x128xbf16>
    "tpu.trace_start"() <{level = 10 : i32, message = "bij,bjm->bim"}> : () -> ()
    %cst_17 = arith.constant dense<0.000000e+00> : vector<4x64x128xf32>
    %25 = tpu.matmul %0, %24, %cst_17 {dimension_numbers = #tpu.dot_dimension_numbers<[2], [1], [1], [2], [0, 0, 0, 1, 1, 2], [0], [0]>} : vector<4x64x64xbf16>, vector<4x64x128xbf16>, vector<4x64x128xf32> -> vector<4x64x128xf32>
    "tpu.trace_stop"() : () -> ()
    %26 = arith.truncf %25 : vector<4x64x128xf32> to vector<4x64x128xbf16>
    %c0_18 = arith.constant 0 : index
    %c0_19 = arith.constant 0 : index
    %c0_20 = arith.constant 0 : index
    %27 = vector.load %arg6[%c0_18, %c0_19, %c0_20] : memref<4x64x128xbf16, #tpu.memory_space<vmem>>, vector<4x64x128xbf16>
    tpu.vector_store %arg6[%c0_18, %c0_19, %c0_20], %26 {strides = array<i32>} : memref<4x64x128xbf16, #tpu.memory_space<vmem>>, vector<4x64x128xbf16>,
    return
  }
  func.func @transform_0(%arg0: i32) -> (i32, i32, i32) {
    %c0_i32 = arith.constant 0 : i32
    %c0_i32_0 = arith.constant 0 : i32
    %c0_i32_1 = arith.constant 0 : i32
    return %arg0, %c0_i32, %c0_i32_0 : i32, i32, i32
  }
  func.func @transform_1(%arg0: i32) -> (i32, i32, i32) {
    %c0_i32 = arith.constant 0 : i32
    %c0_i32_0 = arith.constant 0 : i32
    %c0_i32_1 = arith.constant 0 : i32
    return %arg0, %c0_i32, %c0_i32_0 : i32, i32, i32
  }
  func.func @transform_2(%arg0: i32) -> (i32, i32) {
    %c0_i32 = arith.constant 0 : i32
    %c0_i32_0 = arith.constant 0 : i32
    %c0_i32_1 = arith.constant 0 : i32
    return %c0_i32, %c0_i32_0 : i32, i32
  }
  func.func @transform_3(%arg0: i32) -> (i32, i32) {
    %c0_i32 = arith.constant 0 : i32
    %c0_i32_0 = arith.constant 0 : i32
    %c0_i32_1 = arith.constant 0 : i32
    return %c0_i32, %c0_i32_0 : i32, i32
  }
  func.func @transform_4(%arg0: i32) -> (i32, i32) {
    %c0_i32 = arith.constant 0 : i32
    %c0_i32_0 = arith.constant 0 : i32
    %c0_i32_1 = arith.constant 0 : i32
    return %c0_i32, %c0_i32_0 : i32, i32
  }
  func.func @transform_5(%arg0: i32) -> (i32, i32, i32) {
    %c0_i32 = arith.constant 0 : i32
    %c0_i32_0 = arith.constant 0 : i32
    %c0_i32_1 = arith.constant 0 : i32
    return %arg0, %c0_i32, %c0_i32_0 : i32, i32, i32
  }
}

</mosaic_0001>

<bundles_post_ra>
// kernel: tpu_custom_call.1
= control target key start
LH: loop header
LB: loop body
LE: loop exit
PB: predicated region body
PF: predicated region fallthrough
CT: control target
= control target key end

     0   :  { %s2657_s0 = inlined_call_operand.vmem [shape: bf16[4,64,64], index: 0, kind: input, shape index: {}]   ;;  %s2658_s1 = inlined_call_operand.vmem [shape: bf16[4,64,32], index: 1, kind: input, shape index: {}]   ;;  %s2659_s2 = inlined_call_operand.vmem [shape: bf16[32,32], index: 2, kind: input, shape index: {}]   ;;  %s2660_s3 = inlined_call_operand.vmem [shape: bf16[32,32], index: 3, kind: input, shape index: {}]   ;;  %s2661_s4 = inlined_call_operand.vmem [shape: bf16[32,128], index: 4, kind: input, shape index: {}]   ;;  %s2662_s5 = inlined_call_operand.hbm [shape: bf16[4,64,128], index: 5, kind: output, shape index: {}]  }
   0x1   :  { %v2138_v0 = vld [vmem:[%s2659_s2 + $0x8] sm:$0xff] }
   0x2   :  { %10 = vsyncpa [#allocation3], 0  ;;  %237 = vmatpush.bf16.msra.mxu0 %v2138_v0  ;;  %v2137_v1 = vld [vmem:[%s2659_s2] sm:$0xff]  ;;  %vm182_vm0 = vcmask 261120   ;;  %v2122_v3 = vld [vmem:[%s2658_s1 + $0x8] sm:$0xff]  ;;  %vm396_vm1 = vcmask 523264  }
   0x3   :  { %v2121_v2 = vld [vmem:[%s2658_s1] sm:$0xff]  ;;  %v2123_v4 = vld [vmem:[%s2658_s1 + $0x10] sm:$0xff]  ;;  %v2124_v5 = vld [vmem:[%s2658_s1 + $0x18] sm:$0xff]  ;;  %s1845_s18 = sshll.u32 %s2662_s5, 4  ;;  %s2284_s19 = smov 64   ;;  %s1846_s18 = int_to_ptr.hbm [resolvable:$true] %s1845_s18 }
   0x4   :  { %v2125_v6 = vld [vmem:[%s2658_s1 + $0x20] sm:$0xff]  ;;  %v2126_v7 = vld [vmem:[%s2658_s1 + $0x28] sm:$0xff]  ;;  %v2127_v8 = vld [vmem:[%s2658_s1 + $0x30] sm:$0xff]  ;;  %s2285_s20 = smov 4  }
   0x5   :  { %v2128_v9 = vld [vmem:[%s2658_s1 + $0x38] sm:$0xff]  ;;  %v2129_v10 = vld [vmem:[%s2658_s1 + $0x40] sm:$0xff]  ;;  %v2130_v13 = vld [vmem:[%s2658_s1 + $0x48] sm:$0xff] }
   0x6   :  { %238 = vmatpush.bf16.msra.mxu0 %v2137_v1  ;;  %v2131_v16 = vld [vmem:[%s2658_s1 + $0x50] sm:$0xff]  ;;  %v2132_v19 = vld [vmem:[%s2658_s1 + $0x58] sm:$0xff]  ;;  %v2133_v37 = vld [vmem:[%s2658_s1 + $0x60] sm:$0xff] }
   0x7   :  { %v2134_v46 = vld [vmem:[%s2658_s1 + $0x68] sm:$0xff]  ;;  %v2381_v47 = vld [vmem:[%s2657_s0] sm:$0xff]  ;;  %v2135_v50 = vld [vmem:[%s2658_s1 + $0x70] sm:$0xff] }
   0x8   :  { %v2392_v51 = vld [vmem:[%s2657_s0 + $0x8] sm:$0xff]  ;;  %v2136_v54 = vld [vmem:[%s2658_s1 + $0x78] sm:$0xff]  ;;  %v2403_v55 = vld [vmem:[%s2657_s0 + $0x10] sm:$0xff] }
   0x9   :  { %1929 = vmatmul.msk.bf16.vlgmr.msra.gmra.mxu0 %vm182_vm0, %v2121_v2 }
  0x19   :  { %1930 = vmatmul.msk.bf16.gmra.mxu0 %vm182_vm0, %v2122_v3 }
  0x29   :  { %1931 = vmatmul.msk.bf16.gmra.mxu0 %vm182_vm0, %v2123_v4 }
  0x39   :  { %1932 = vmatmul.msk.bf16.gmra.mxu0 %vm182_vm0, %v2124_v5 }
  0x49   :  { %1933 = vmatmul.msk.bf16.gmra.mxu0 %vm182_vm0, %v2125_v6 }
  0x59   :  { %1934 = vmatmul.msk.bf16.gmra.mxu0 %vm182_vm0, %v2126_v7 }
  0x69   :  { %1935 = vmatmul.msk.bf16.gmra.mxu0 %vm182_vm0, %v2127_v8 }
  0x79   :  { %1936 = vmatmul.msk.bf16.gmra.mxu0 %vm182_vm0, %v2128_v9 }
  0x86   :  { %v240_v11 = vpop.f32.mrf.mxu0 }
  0x87   :  { %v320_v38 = vpack.c.bf16 %v240_v11, %v240_v11 }
  0x89   :  { %1937 = vmatmul.msk.bf16.gmra.mxu0 %vm182_vm0, %v2129_v10  ;;  %v380_v42 = vunpack.c.l.b16 %v320_v38 }
  0x8e   :  { %v242_v12 = vpop.f32.mrf.mxu0 }
  0x8f   :  { %v321_v34 = vpack.c.bf16 %v242_v12, %v242_v12  ;;  %v2410_v12 = vld [vmem:[%s2657_s0 + $0x18] sm:$0xff] }
  0x91   :  { %v381_v40 = vunpack.c.l.b16 %v321_v34 }
  0x93   :  { %v388_v44 = vpack.c.b16 %v381_v40, %v380_v42 }
  0x96   :  { %v245_v14 = vpop.f32.mrf.mxu0 }
  0x97   :  { %v322_v31 = vpack.c.bf16 %v245_v14, %v245_v14 }
  0x99   :  { %1938 = vmatmul.msk.bf16.gmra.mxu0 %vm182_vm0, %v2130_v13  ;;  %v382_v39 = vunpack.c.l.b16 %v322_v31 }
  0x9e   :  { %v247_v15 = vpop.f32.mrf.mxu0 }
  0x9f   :  { %v323_v28 = vpack.c.bf16 %v247_v15, %v247_v15 }
  0xa1   :  { %v383_v35 = vunpack.c.l.b16 %v323_v28  ;;  %v2438_v28 = vld [vmem:[%s2657_s0 + $0x38] sm:$0xff] }
  0xa3   :  { %v389_v41 = vpack.c.b16 %v383_v35, %v382_v39 }
  0xa6   :  { %v250_v17 = vpop.f32.mrf.mxu0 }
  0xa7   :  { %v324_v25 = vpack.c.bf16 %v250_v17, %v250_v17 }
  0xa9   :  { %1939 = vmatmul.msk.bf16.gmra.mxu0 %vm182_vm0, %v2131_v16  ;;  %v384_v32 = vunpack.c.l.b16 %v324_v25  ;;  %v2417_v16 = vld [vmem:[%s2657_s0 + $0x20] sm:$0xff] }
  0xae   :  { %v252_v18 = vpop.f32.mrf.mxu0 }
  0xaf   :  { %v325_v23 = vpack.c.bf16 %v252_v18, %v252_v18 }
  0xb1   :  { %v385_v29 = vunpack.c.l.b16 %v325_v23 }
  0xb3   :  { %v390_v36 = vpack.c.b16 %v385_v29, %v384_v32 }
  0xb6   :  { %v255_v20 = vpop.f32.mrf.mxu0 }
  0xb7   :  { %v326_v21 = vpack.c.bf16 %v255_v20, %v255_v20 }
  0xb9   :  { %1940 = vmatmul.msk.bf16.gmra.mxu0 %vm182_vm0, %v2132_v19  ;;  %v386_v26 = vunpack.c.l.b16 %v326_v21  ;;  %v2424_v19 = vld [vmem:[%s2657_s0 + $0x28] sm:$0xff] }
  0xbe   :  { %v257_v22 = vpop.f32.mrf.mxu0 }
  0xbf   :  { %v327_v24 = vpack.c.bf16 %v257_v22, %v257_v22  ;;  %v2431_v22 = vld [vmem:[%s2657_s0 + $0x30] sm:$0xff] }
  0xc1   :  { %v387_v27 = vunpack.c.l.b16 %v327_v24 }
  0xc3   :  { %v391_v30 = vpack.c.b16 %v387_v27, %v386_v26 }
  0xc5   :  { %413 = vmatpush.bf16.msra.mxu1 %v391_v30 }
  0xc6   :  { %v260_v33 = vpop.f32.mrf.mxu0 }
  0xc7   :  { %v328_v8 = vpack.c.bf16 %v260_v33, %v260_v33 }
  0xc9   :  { %414 = vmatpush.bf16.msra.mxu1 %v390_v36  ;;  %1941 = vmatmul.msk.bf16.gmra.mxu0 %vm182_vm0, %v2133_v37  ;;  %v466_v13 = vunpack.c.l.b16 %v328_v8 }
  0xcd   :  { %415 = vmatpush.bf16.msra.mxu1 %v389_v41 }
  0xce   :  { %v262_v43 = vpop.f32.mrf.mxu0 }
  0xcf   :  { %v329_v5 = vpack.c.bf16 %v262_v43, %v262_v43 }
  0xd1   :  { %416 = vmatpush.bf16.msra.mxu1 %v388_v44  ;;  %v467_v10 = vunpack.c.l.b16 %v329_v5 }
  0xd3   :  { %v474_v15 = vpack.c.b16 %v467_v10, %v466_v13 }
  0xd4   :  { %1961 = vmatmul.msk.bf16.vlgmr.msra.gmra.mxu1 %vm396_vm1, %v2381_v47 }
  0xd6   :  { %v265_v45 = vpop.f32.mrf.mxu0 }
  0xd7   :  { %v330_v2 = vpack.c.bf16 %v265_v45, %v265_v45 }
  0xd9   :  { %1942 = vmatmul.msk.bf16.gmra.mxu0 %vm182_vm0, %v2134_v46  ;;  %v468_v9 = vunpack.c.l.b16 %v330_v2  ;;  %v2472_v2 = vld [vmem:[%s2657_s0 + $0x58] sm:$0xff] }
  0xde   :  { %v267_v48 = vpop.f32.mrf.mxu0 }
  0xdf   :  { %v331_v63 = vpack.c.bf16 %v267_v48, %v267_v48 }
  0xe1   :  { %v469_v6 = vunpack.c.l.b16 %v331_v63 }
  0xe3   :  { %v475_v11 = vpack.c.b16 %v469_v6, %v468_v9 }
  0xe4   :  { %1962 = vmatmul.msk.bf16.gmra.mxu1 %vm396_vm1, %v2392_v51 }
  0xe6   :  { %v270_v49 = vpop.f32.mrf.mxu0 }
  0xe7   :  { %v332_v60 = vpack.c.bf16 %v270_v49, %v270_v49  ;;  %v2445_v49 = vld [vmem:[%s2657_s0 + $0x40] sm:$0xff] }
  0xe9   :  { %1943 = vmatmul.msk.bf16.gmra.mxu0 %vm182_vm0, %v2135_v50  ;;  %v470_v3 = vunpack.c.l.b16 %v332_v60  ;;  %v2465_v60 = vld [vmem:[%s2657_s0 + $0x50] sm:$0xff] }
  0xee   :  { %v272_v52 = vpop.f32.mrf.mxu0 }
  0xef   :  { %v333_v58 = vpack.c.bf16 %v272_v52, %v272_v52 }
  0xf1   :  { %v471_v0 = vunpack.c.l.b16 %v333_v58 }
  0xf3   :  { %v476_v7 = vpack.c.b16 %v471_v0, %v470_v3 }
  0xf4   :  { %1963 = vmatmul.msk.bf16.gmra.mxu1 %vm396_vm1, %v2403_v55 }
  0xf6   :  { %v275_v53 = vpop.f32.mrf.mxu0 }
  0xf7   :  { %v334_v56 = vpack.c.bf16 %v275_v53, %v275_v53  ;;  %v2452_v53 = vld [vmem:[%s2657_s0 + $0x48] sm:$0xff] }
  0xf9   :  { %1944 = vmatmul.msk.bf16.gmra.mxu0 %vm182_vm0, %v2136_v54  ;;  %v472_v61 = vunpack.c.l.b16 %v334_v56  ;;  %v2140_v54 = vld [vmem:[%s2660_s3 + $0x8] sm:$0xff]  ;;  %v2139_v56 = vld [vmem:[%s2660_s3] sm:$0xff] }
  0xfe   :  { %v277_v57 = vpop.f32.mrf.mxu0 }
  0xff   :  { %v335_v59 = vpack.c.bf16 %v277_v57, %v277_v57 }
 0x101   :  { %v473_v62 = vunpack.c.l.b16 %v335_v59 }
 0x103   :  { %v477_v1 = vpack.c.b16 %v473_v62, %v472_v61 }
 0x104   :  { %1964 = vmatmul.msk.bf16.gmra.mxu1 %vm396_vm1, %v2410_v12 }
 0x105   :  { %498 = vmatpush.bf16.msra.mxu2 %v477_v1 }
 0x106   :  { %v280_v4 = vpop.f32.mrf.mxu0 }
 0x107   :  { %v336_v41 = vpack.c.bf16 %v280_v4, %v280_v4 }
 0x109   :  { %499 = vmatpush.bf16.msra.mxu2 %v476_v7  ;;  %v551_v45 = vunpack.c.l.b16 %v336_v41 }
 0x10d   :  { %500 = vmatpush.bf16.msra.mxu2 %v475_v11 }
 0x10e   :  { %v282_v14 = vpop.f32.mrf.mxu0 }
 0x10f   :  { %v337_v38 = vpack.c.bf16 %v282_v14, %v282_v14 }
 0x111   :  { %501 = vmatpush.bf16.msra.mxu2 %v474_v15  ;;  %v552_v43 = vunpack.c.l.b16 %v337_v38 }
 0x113   :  { %v559_v48 = vpack.c.b16 %v552_v43, %v551_v45 }
 0x114   :  { %1981 = vmatmul.msk.bf16.vlgmr.msra.gmra.mxu2 %vm396_vm1, %v2417_v16 }
 0x116   :  { %v285_v17 = vpop.f32.mrf.mxu0 }
 0x117   :  { %v338_v35 = vpack.c.bf16 %v285_v17, %v285_v17 }
 0x119   :  { %v553_v42 = vunpack.c.l.b16 %v338_v35 }
 0x11e   :  { %v287_v18 = vpop.f32.mrf.mxu0 }
 0x11f   :  { %v339_v32 = vpack.c.bf16 %v287_v18, %v287_v18 }
 0x121   :  { %v554_v39 = vunpack.c.l.b16 %v339_v32 }
 0x123   :  { %v560_v44 = vpack.c.b16 %v554_v39, %v553_v42 }
 0x124   :  { %1982 = vmatmul.msk.bf16.gmra.mxu2 %vm396_vm1, %v2424_v19 }
 0x126   :  { %v290_v20 = vpop.f32.mrf.mxu0 }
 0x127   :  { %v340_v29 = vpack.c.bf16 %v290_v20, %v290_v20 }
 0x129   :  { %v555_v36 = vunpack.c.l.b16 %v340_v29 }
 0x12e   :  { %v292_v21 = vpop.f32.mrf.mxu0 }
 0x12f   :  { %v341_v26 = vpack.c.bf16 %v292_v21, %v292_v21 }
 0x131   :  { %v556_v33 = vunpack.c.l.b16 %v341_v26 }
 0x133   :  { %v561_v40 = vpack.c.b16 %v556_v33, %v555_v36 }
 0x134   :  { %1983 = vmatmul.msk.bf16.gmra.mxu2 %vm396_vm1, %v2431_v22 }
 0x136   :  { %v295_v23 = vpop.f32.mrf.mxu0 }
 0x137   :  { %v342_v24 = vpack.c.bf16 %v295_v23, %v295_v23 }
 0x139   :  { %v557_v30 = vunpack.c.l.b16 %v342_v24 }
 0x13e   :  { %v297_v25 = vpop.f32.mrf.mxu0 }
 0x13f   :  { %v343_v27 = vpack.c.bf16 %v297_v25, %v297_v25 }
 0x141   :  { %v558_v31 = vunpack.c.l.b16 %v343_v27 }
 0x143   :  { %v562_v34 = vpack.c.b16 %v558_v31, %v557_v30 }
 0x144   :  { %1984 = vmatmul.msk.bf16.gmra.mxu2 %vm396_vm1, %v2438_v28 }
 0x145   :  { %583 = vmatpush.bf16.msrb.mxu2 %v562_v34 }
 0x146   :  { %v300_v37 = vpop.f32.mrf.mxu0 }
 0x147   :  { %v344_v14 = vpack.c.bf16 %v300_v37, %v300_v37 }
 0x149   :  { %584 = vmatpush.bf16.msrb.mxu2 %v561_v40  ;;  %v636_v27 = vunpack.c.l.b16 %v344_v14 }
 0x14d   :  { %585 = vmatpush.bf16.msrb.mxu2 %v560_v44 }
 0x14e   :  { %v302_v46 = vpop.f32.mrf.mxu0 }
 0x14f   :  { %v345_v15 = vpack.c.bf16 %v302_v46, %v302_v46  ;;  %v2481_v46 = vld [vmem:[%s2657_s0 + $0x60] sm:$0xff] }
 0x151   :  { %586 = vmatpush.bf16.msrb.mxu2 %v559_v48  ;;  %v418_v58 = vpop.f32.mrf.mxu1  ;;  %v637_v29 = vunpack.c.l.b16 %v345_v15 }
 0x152   :  { %v693_v11 = vmax.f32 %v418_v58, 0.0 }
 0x153   :  { %v644_v33 = vpack.c.b16 %v637_v29, %v636_v27 }
 0x154   :  { %2001 = vmatmul.msk.bf16.vlgmr.msrb.gmra.mxu2 %vm396_vm1, %v2445_v49  ;;  %v725_v24 = vpack.c.bf16 %v693_v11, %v693_v11  ;;  %v2497_v11 = vld [vmem:[%s2657_s0 + $0x70] sm:$0xff] }
 0x155   :  { %907 = vmatpush.bf16.msra.mxu2 %v2140_v54 }
 0x156   :  { %v305_v50 = vpop.f32.mrf.mxu0  ;;  %v793_v31 = vunpack.c.l.b16 %v725_v24 }
 0x157   :  { %v346_v17 = vpack.c.bf16 %v305_v50, %v305_v50 }
 0x159   :  { %908 = vmatpush.bf16.msra.mxu2 %v2139_v56  ;;  %v420_v62 = vpop.f32.mrf.mxu1  ;;  %v638_v21 = vunpack.c.l.b16 %v346_v17 }
 0x15a   :  { %v694_v13 = vmax.f32 %v420_v62, 0.0 }
 0x15c   :  { %v726_v25 = vpack.c.bf16 %v694_v13, %v694_v13 }
 0x15e   :  { %v307_v52 = vpop.f32.mrf.mxu0  ;;  %v794_v32 = vunpack.c.l.b16 %v726_v25  ;;  %v2505_v25 = vld [vmem:[%s2657_s0 + $0x78] sm:$0xff] }
 0x15f   :  { %v347_v18 = vpack.c.bf16 %v307_v52, %v307_v52 }
 0x160   :  { %v825_v34 = vpack.c.b16 %v794_v32, %v793_v31 }
 0x161   :  { %v423_v3 = vpop.f32.mrf.mxu1  ;;  %v639_v23 = vunpack.c.l.b16 %v347_v18 }
 0x162   :  { %v695_v36 = vmax.f32 %v423_v3, 0.0 }
 0x163   :  { %v645_v30 = vpack.c.b16 %v639_v23, %v638_v21 }
 0x164   :  { %2002 = vmatmul.msk.bf16.gmra.mxu2 %vm396_vm1, %v2452_v53  ;;  %v727_v39 = vpack.c.bf16 %v695_v36, %v695_v36 }
 0x166   :  { %v310_v57 = vpop.f32.mrf.mxu0  ;;  %v795_v41 = vunpack.c.l.b16 %v727_v39 }
 0x167   :  { %v348_v6 = vpack.c.bf16 %v310_v57, %v310_v57 }
 0x169   :  { %v640_v9 = vunpack.c.l.b16 %v348_v6  ;;  %v425_v26 = vpop.f32.mrf.mxu1 }
 0x16a   :  { %v696_v37 = vmax.f32 %v425_v26, 0.0 }
 0x16c   :  { %v728_v40 = vpack.c.bf16 %v696_v37, %v696_v37 }
 0x16e   :  { %v312_v59 = vpop.f32.mrf.mxu0  ;;  %v796_v42 = vunpack.c.l.b16 %v728_v40 }
 0x16f   :  { %v349_v7 = vpack.c.bf16 %v312_v59, %v312_v59 }
 0x170   :  { %v826_v45 = vpack.c.b16 %v796_v42, %v795_v41 }
 0x171   :  { %v641_v10 = vunpack.c.l.b16 %v349_v7  ;;  %v428_v35 = vpop.f32.mrf.mxu1 }
 0x172   :  { %v697_v48 = vmax.f32 %v428_v35, 0.0 }
 0x173   :  { %v646_v20 = vpack.c.b16 %v641_v10, %v640_v9 }
 0x174   :  { %2003 = vmatmul.msk.bf16.gmra.mxu2 %vm396_vm1, %v2465_v60  ;;  %v729_v56 = vpack.c.bf16 %v697_v48, %v697_v48 }
 0x176   :  { %v315_v61 = vpop.f32.mrf.mxu0  ;;  %v797_v58 = vunpack.c.l.b16 %v729_v56 }
 0x177   :  { %v350_v0 = vpack.c.bf16 %v315_v61, %v315_v61 }
 0x179   :  { %v642_v4 = vunpack.c.l.b16 %v350_v0  ;;  %v430_v44 = vpop.f32.mrf.mxu1  ;;  %v2489_v0 = vld [vmem:[%s2657_s0 + $0x68] sm:$0xff] }
 0x17a   :  { %v698_v50 = vmax.f32 %v430_v44, 0.0 }
 0x17c   :  { %v730_v57 = vpack.c.bf16 %v698_v50, %v698_v50 }
 0x17e   :  { %v317_v63 = vpop.f32.mrf.mxu0  ;;  %v798_v59 = vunpack.c.l.b16 %v730_v57 }
 0x17f   :  { %v351_v1 = vpack.c.bf16 %v317_v63, %v317_v63 }
 0x180   :  { %v827_v62 = vpack.c.b16 %v798_v59, %v797_v58 }
 0x181   :  { %v643_v5 = vunpack.c.l.b16 %v351_v1  ;;  %v433_v54 = vpop.f32.mrf.mxu1 }
 0x182   :  { %v699_v1 = vmax.f32 %v433_v54, 0.0 }
 0x183   :  { %v647_v8 = vpack.c.b16 %v643_v5, %v642_v4 }
 0x184   :  { %2004 = vmatmul.msk.bf16.gmra.mxu2 %vm396_vm1, %v2472_v2  ;;  %v731_v5 = vpack.c.bf16 %v699_v1, %v699_v1 }
 0x185   :  { %668 = vmatpush.bf16.msrb.mxu1 %v647_v8 }
 0x186   :  { %v799_v7 = vunpack.c.l.b16 %v731_v5 }
 0x189   :  { %669 = vmatpush.bf16.msrb.mxu1 %v646_v20  ;;  %v435_v63 = vpop.f32.mrf.mxu1 }
 0x18a   :  { %v700_v3 = vmax.f32 %v435_v63, 0.0 }
 0x18c   :  { %v732_v6 = vpack.c.bf16 %v700_v3, %v700_v3 }
 0x18d   :  { %670 = vmatpush.bf16.msrb.mxu1 %v645_v30 }
 0x18e   :  { %v800_v8 = vunpack.c.l.b16 %v732_v6 }
 0x190   :  { %v828_v10 = vpack.c.b16 %v800_v8, %v799_v7 }
 0x191   :  { %671 = vmatpush.bf16.msrb.mxu1 %v644_v33 }
 0x194   :  { %2033 = vmatmul.msk.bf16.vlgmr.msra.gmra.mxu2 %vm182_vm0, %v825_v34  ;;  %2021 = vmatmul.msk.bf16.vlgmr.msrb.gmra.mxu1 %vm396_vm1, %v2481_v46 }
 0x197   :  { %v503_v38 = vpop.f32.mrf.mxu2 }
 0x198   :  { %v701_v15 = vmax.f32 %v503_v38, 0.0 }
 0x19a   :  { %v733_v18 = vpack.c.bf16 %v701_v15, %v701_v15 }
 0x19c   :  { %v801_v23 = vunpack.c.l.b16 %v733_v18 }
 0x19f   :  { %v505_v43 = vpop.f32.mrf.mxu2 }
 0x1a0   :  { %v702_v13 = vmax.f32 %v505_v43, 0.0 }
 0x1a2   :  { %v734_v17 = vpack.c.bf16 %v702_v13, %v702_v13 }
 0x1a4   :  { %2034 = vmatmul.msk.bf16.gmra.mxu2 %vm182_vm0, %v826_v45  ;;  %2022 = vmatmul.msk.bf16.gmra.mxu1 %vm396_vm1, %v2489_v0  ;;  %v802_v20 = vunpack.c.l.b16 %v734_v17 }
 0x1a6   :  { %v829_v24 = vpack.c.b16 %v802_v20, %v801_v23 }
 0x1a7   :  { %v508_v52 = vpop.f32.mrf.mxu2 }
 0x1a8   :  { %v703_v29 = vmax.f32 %v508_v52, 0.0 }
 0x1aa   :  { %v735_v31 = vpack.c.bf16 %v703_v29, %v703_v29 }
 0x1ac   :  { %v803_v34 = vunpack.c.l.b16 %v735_v31 }
 0x1af   :  { %v510_v61 = vpop.f32.mrf.mxu2 }
 0x1b0   :  { %v704_v26 = vmax.f32 %v510_v61, 0.0 }
 0x1b2   :  { %v736_v30 = vpack.c.bf16 %v704_v26, %v704_v26 }
 0x1b4   :  { %2035 = vmatmul.msk.bf16.gmra.mxu2 %vm182_vm0, %v827_v62  ;;  %2023 = vmatmul.msk.bf16.gmra.mxu1 %vm396_vm1, %v2497_v11  ;;  %v804_v32 = vunpack.c.l.b16 %v736_v30 }
 0x1b6   :  { %v830_v35 = vpack.c.b16 %v804_v32, %v803_v34 }
 0x1b7   :  { %v513_v4 = vpop.f32.mrf.mxu2 }
 0x1b8   :  { %v705_v38 = vmax.f32 %v513_v4, 0.0 }
 0x1ba   :  { %v737_v40 = vpack.c.bf16 %v705_v38, %v705_v38 }
 0x1bc   :  { %v805_v43 = vunpack.c.l.b16 %v737_v40 }
 0x1bf   :  { %v515_v9 = vpop.f32.mrf.mxu2 }
 0x1c0   :  { %v706_v36 = vmax.f32 %v515_v9, 0.0 }
 0x1c2   :  { %v738_v39 = vpack.c.bf16 %v706_v36, %v706_v36 }
 0x1c4   :  { %2036 = vmatmul.msk.bf16.gmra.mxu2 %vm182_vm0, %v828_v10  ;;  %2024 = vmatmul.msk.bf16.gmra.mxu1 %vm396_vm1, %v2505_v25  ;;  %v806_v41 = vunpack.c.l.b16 %v738_v39 }
 0x1c6   :  { %v831_v44 = vpack.c.b16 %v806_v41, %v805_v43 }
 0x1c7   :  { %v518_v14 = vpop.f32.mrf.mxu2 }
 0x1c8   :  { %v707_v50 = vmax.f32 %v518_v14, 0.0 }
 0x1ca   :  { %v739_v54 = vpack.c.bf16 %v707_v50, %v707_v50 }
 0x1cc   :  { %v807_v58 = vunpack.c.l.b16 %v739_v54 }
 0x1cf   :  { %v520_v21 = vpop.f32.mrf.mxu2 }
 0x1d0   :  { %v708_v45 = vmax.f32 %v520_v21, 0.0 }
 0x1d2   :  { %v740_v52 = vpack.c.bf16 %v708_v45, %v708_v45 }
 0x1d4   :  { %2037 = vmatmul.msk.bf16.gmra.mxu2 %vm182_vm0, %v829_v24  ;;  %v808_v56 = vunpack.c.l.b16 %v740_v52 }
 0x1d6   :  { %v832_v59 = vpack.c.b16 %v808_v56, %v807_v58 }
 0x1d7   :  { %v588_v27 = vpop.f32.mrf.mxu2 }
 0x1d8   :  { %v709_v63 = vmax.f32 %v588_v27, 0.0 }
 0x1da   :  { %v741_v3 = vpack.c.bf16 %v709_v63, %v709_v63 }
 0x1dc   :  { %v809_v6 = vunpack.c.l.b16 %v741_v3 }
 0x1df   :  { %v590_v33 = vpop.f32.mrf.mxu2 }
 0x1e0   :  { %v710_v61 = vmax.f32 %v590_v33, 0.0 }
 0x1e2   :  { %v742_v1 = vpack.c.bf16 %v710_v61, %v710_v61 }
 0x1e4   :  { %2038 = vmatmul.msk.bf16.gmra.mxu2 %vm182_vm0, %v830_v35  ;;  %v810_v4 = vunpack.c.l.b16 %v742_v1 }
 0x1e6   :  { %v833_v7 = vpack.c.b16 %v810_v4, %v809_v6 }
 0x1e7   :  { %v593_v37 = vpop.f32.mrf.mxu2 }
 0x1e8   :  { %v711_v10 = vmax.f32 %v593_v37, 0.0 }
 0x1ea   :  { %v743_v14 = vpack.c.bf16 %v711_v10, %v711_v10 }
 0x1ec   :  { %v811_v18 = vunpack.c.l.b16 %v743_v14 }
 0x1ef   :  { %v595_v42 = vpop.f32.mrf.mxu2 }
 0x1f0   :  { %v712_v8 = vmax.f32 %v595_v42, 0.0 }
 0x1f2   :  { %v744_v13 = vpack.c.bf16 %v712_v8, %v712_v8 }
 0x1f4   :  { %2039 = vmatmul.msk.bf16.gmra.mxu2 %vm182_vm0, %v831_v44  ;;  %v812_v15 = vunpack.c.l.b16 %v744_v13 }
 0x1f6   :  { %v834_v20 = vpack.c.b16 %v812_v15, %v811_v18 }
 0x1f7   :  { %v598_v48 = vpop.f32.mrf.mxu2 }
 0x1f8   :  { %v713_v24 = vmax.f32 %v598_v48, 0.0 }
 0x1fa   :  { %v745_v29 = vpack.c.bf16 %v713_v24, %v713_v24 }
 0x1fc   :  { %v813_v32 = vunpack.c.l.b16 %v745_v29 }
 0x1ff   :  { %v600_v57 = vpop.f32.mrf.mxu2 }
 0x200   :  { %v714_v21 = vmax.f32 %v600_v57, 0.0 }
 0x202   :  { %v746_v26 = vpack.c.bf16 %v714_v21, %v714_v21 }
 0x204   :  { %2040 = vmatmul.msk.bf16.gmra.mxu2 %vm182_vm0, %v832_v59  ;;  %v814_v30 = vunpack.c.l.b16 %v746_v26 }
 0x206   :  { %v835_v33 = vpack.c.b16 %v814_v30, %v813_v32 }
 0x207   :  { %v603_v62 = vpop.f32.mrf.mxu2 }
 0x208   :  { %v715_v37 = vmax.f32 %v603_v62, 0.0 }
 0x20a   :  { %v747_v39 = vpack.c.bf16 %v715_v37, %v715_v37 }
 0x20c   :  { %v815_v43 = vunpack.c.l.b16 %v747_v39 }
 0x20f   :  { %v605_v5 = vpop.f32.mrf.mxu2 }
 0x210   :  { %v716_v35 = vmax.f32 %v605_v5, 0.0 }
 0x211   :  { %v673_v27 = vpop.f32.mrf.mxu1 }
 0x212   :  { %v748_v38 = vpack.c.bf16 %v716_v35, %v716_v35  ;;  %v717_v45 = vmax.f32 %v673_v27, 0.0 }
 0x214   :  { %2041 = vmatmul.msk.bf16.gmra.mxu2 %vm182_vm0, %v833_v7  ;;  %v816_v40 = vunpack.c.l.b16 %v748_v38  ;;  %v749_v52 = vpack.c.bf16 %v717_v45, %v717_v45 }
 0x216   :  { %v836_v44 = vpack.c.b16 %v816_v40, %v815_v43  ;;  %v817_v57 = vunpack.c.l.b16 %v749_v52 }
 0x217   :  { %v2513_v9 = vpop.f32.mrf.mxu2 }
 0x218   :  { %v990_v30 = vpack.c.bf16 %v2513_v9, %v2513_v9 }
 0x219   :  { %v675_v34 = vpop.f32.mrf.mxu1 }
 0x21a   :  { %v718_v48 = vmax.f32 %v675_v34, 0.0 }
 0x21c   :  { %v750_v54 = vpack.c.bf16 %v718_v48, %v718_v48 }
 0x21e   :  { %v818_v58 = vunpack.c.l.b16 %v750_v54 }
 0x21f   :  { %v912_v17 = vpop.f32.mrf.mxu2 }
 0x220   :  { %v837_v1 = vpack.c.b16 %v818_v58, %v817_v57 }
 0x221   :  { %v678_v42 = vpop.f32.mrf.mxu1 }
 0x222   :  { %v719_v13 = vmax.f32 %v678_v42, 0.0 }
 0x224   :  { %2042 = vmatmul.msk.bf16.gmra.mxu2 %vm182_vm0, %v834_v20  ;;  %v991_v20 = vpack.c.bf16 %v912_v17, %v912_v17  ;;  %v751_v27 = vpack.c.bf16 %v719_v13, %v719_v13 }
 0x226   :  { %v1031_v32 = vunpack.c.l.b16 %v991_v20  ;;  %v819_v34 = vunpack.c.l.b16 %v751_v27 }
 0x227   :  { %v915_v23 = vpop.f32.mrf.mxu2 }
 0x228   :  { %v992_v15 = vpack.c.bf16 %v915_v23, %v915_v23  ;;  %v1030_v23 = vunpack.c.l.b16 %v990_v30 }
 0x229   :  { %v680_v56 = vpop.f32.mrf.mxu1 }
 0x22a   :  { %v720_v14 = vmax.f32 %v680_v56, 0.0  ;;  %v1038_v17 = vpack.c.b16 %v1031_v32, %v1030_v23 }
 0x22c   :  { %v752_v29 = vpack.c.bf16 %v720_v14, %v720_v14 }
 0x22e   :  { %v820_v35 = vunpack.c.l.b16 %v752_v29 }
 0x22f   :  { %v917_v31 = vpop.f32.mrf.mxu2 }
 0x230   :  { %v993_v6 = vpack.c.bf16 %v917_v31, %v917_v31  ;;  %v1032_v31 = vunpack.c.l.b16 %v992_v15  ;;  %v838_v38 = vpack.c.b16 %v820_v35, %v819_v34 }
 0x231   :  { %v683_v7 = vpop.f32.mrf.mxu1 }
 0x232   :  { %v1033_v24 = vunpack.c.l.b16 %v993_v6  ;;  %v721_v39 = vmax.f32 %v683_v7, 0.0 }
 0x234   :  { %2043 = vmatmul.msk.bf16.gmra.mxu2 %vm182_vm0, %v835_v33  ;;  %v1039_v33 = vpack.c.b16 %v1033_v24, %v1032_v31  ;;  %v753_v42 = vpack.c.bf16 %v721_v39, %v721_v39 }
 0x237   :  { %v920_v36 = vpop.f32.mrf.mxu2 }
 0x238   :  { %v994_v3 = vpack.c.bf16 %v920_v36, %v920_v36 }
 0x239   :  { %v685_v36 = vpop.f32.mrf.mxu1 }
 0x23a   :  { %v1034_v18 = vunpack.c.l.b16 %v994_v3  ;;  %v722_v40 = vmax.f32 %v685_v36, 0.0 }
 0x23c   :  { %v754_v43 = vpack.c.bf16 %v722_v40, %v722_v40 }
 0x23e   :  { %v822_v45 = vunpack.c.l.b16 %v754_v43 }
 0x23f   :  { %v922_v41 = vpop.f32.mrf.mxu2 }
 0x240   :  { %v995_v62 = vpack.c.bf16 %v922_v41, %v922_v41 }
 0x241   :  { %v688_v41 = vpop.f32.mrf.mxu1 }
 0x242   :  { %v1035_v8 = vunpack.c.l.b16 %v995_v62  ;;  %v723_v54 = vmax.f32 %v688_v41, 0.0 }
 0x244   :  { %2044 = vmatmul.msk.bf16.gmra.mxu2 %vm182_vm0, %v836_v44  ;;  %v1040_v26 = vpack.c.b16 %v1035_v8, %v1034_v18  ;;  %v821_v44 = vunpack.c.l.b16 %v753_v42  ;;  %v755_v58 = vpack.c.bf16 %v723_v54, %v723_v54 }
 0x247   :  { %v925_v50 = vpop.f32.mrf.mxu2 }
 0x248   :  { %v996_v59 = vpack.c.bf16 %v925_v50, %v925_v50  ;;  %v839_v50 = vpack.c.b16 %v822_v45, %v821_v44 }
 0x249   :  { %v690_v52 = vpop.f32.mrf.mxu1 }
 0x24a   :  { %v1036_v4 = vunpack.c.l.b16 %v996_v59  ;;  %v724_v56 = vmax.f32 %v690_v52, 0.0 }
 0x24c   :  { %v756_v59 = vpack.c.bf16 %v724_v56, %v724_v56 }
 0x24f   :  { %v927_v61 = vpop.f32.mrf.mxu2 }
 0x250   :  { %v997_v63 = vpack.c.bf16 %v927_v61, %v927_v61  ;;  %v824_v61 = vunpack.c.l.b16 %v756_v59 }
 0x252   :  { %v1037_v5 = vunpack.c.l.b16 %v997_v63 }
 0x254   :  { %v1041_v10 = vpack.c.b16 %v1037_v5, %v1036_v4  ;;  %2045 = vmatmul.msk.bf16.gmra.mxu2 %vm182_vm0, %v837_v1 }
 0x256   :  { %1050 = vmatpush.bf16.msra.mxu3 %v1041_v10 }
 0x257   :  { %v2519_v21 = vpop.f32.mrf.mxu2 }
 0x258   :  { %v998_v27 = vpack.c.bf16 %v2519_v21, %v2519_v21 }
 0x25a   :  { %1051 = vmatpush.bf16.msra.mxu3 %v1040_v26  ;;  %v1083_v32 = vunpack.c.l.b16 %v998_v27 }
 0x25e   :  { %1052 = vmatpush.bf16.msra.mxu3 %v1039_v33 }
 0x25f   :  { %v932_v37 = vpop.f32.mrf.mxu2 }
 0x260   :  { %v999_v24 = vpack.c.bf16 %v932_v37, %v932_v37 }
 0x262   :  { %1053 = vmatpush.bf16.msra.mxu3 %v1038_v17  ;;  %v1084_v30 = vunpack.c.l.b16 %v999_v24 }
 0x264   :  { %2046 = vmatmul.msk.bf16.gmra.mxu2 %vm182_vm0, %v838_v38  ;;  %v1091_v34 = vpack.c.b16 %v1084_v30, %v1083_v32 }
 0x265   :  { %2049 = vmatmul.msk.bf16.vlgmr.msra.gmra.mxu3 %vm396_vm1, %v2381_v47  ;;  %v823_v47 = vunpack.c.l.b16 %v755_v58 }
 0x267   :  { %v935_v9 = vpop.f32.mrf.mxu2  ;;  %v840_v63 = vpack.c.b16 %v824_v61, %v823_v47 }
 0x268   :  { %v1000_v15 = vpack.c.bf16 %v935_v9, %v935_v9 }
 0x26a   :  { %v1085_v29 = vunpack.c.l.b16 %v1000_v15 }
 0x26f   :  { %v937_v48 = vpop.f32.mrf.mxu2 }
 0x270   :  { %v1001_v10 = vpack.c.bf16 %v937_v48, %v937_v48 }
 0x274   :  { %2047 = vmatmul.msk.bf16.gmra.mxu2 %vm182_vm0, %v839_v50 }
 0x275   :  { %2050 = vmatmul.msk.bf16.gmra.mxu3 %vm396_vm1, %v2392_v51 }
 0x277   :  { %v940_v57 = vpop.f32.mrf.mxu2 }
 0x278   :  { %v1002_v7 = vpack.c.bf16 %v940_v57, %v940_v57 }
 0x27a   :  { %v1087_v18 = vunpack.c.l.b16 %v1002_v7 }
 0x27f   :  { %v942_v62 = vpop.f32.mrf.mxu2 }
 0x280   :  { %v1003_v5 = vpack.c.bf16 %v942_v62, %v942_v62  ;;  %v2142_v62 = vld [vmem:[%s2661_s4 + $0x8] sm:$0xff] }
 0x282   :  { %v1088_v13 = vunpack.c.l.b16 %v1003_v5 }
 0x284   :  { %2048 = vmatmul.msk.bf16.gmra.mxu2 %vm182_vm0, %v840_v63  ;;  %v1093_v26 = vpack.c.b16 %v1088_v13, %v1087_v18 }
 0x285   :  { %2051 = vmatmul.msk.bf16.gmra.mxu3 %vm396_vm1, %v2403_v55  ;;  %v1086_v55 = vunpack.c.l.b16 %v1001_v10 }
 0x287   :  { %v945_v1 = vpop.f32.mrf.mxu2  ;;  %v1092_v31 = vpack.c.b16 %v1086_v55, %v1085_v29 }
 0x288   :  { %v1004_v3 = vpack.c.bf16 %v945_v1, %v945_v1  ;;  %v2141_v1 = vld [vmem:[%s2661_s4] sm:$0xff] }
 0x28a   :  { %v1089_v8 = vunpack.c.l.b16 %v1004_v3 }
 0x28f   :  { %v947_v4 = vpop.f32.mrf.mxu2 }
 0x290   :  { %v1005_v6 = vpack.c.bf16 %v947_v4, %v947_v4 }
 0x292   :  { %v1090_v51 = vunpack.c.l.b16 %v1005_v6 }
 0x294   :  { %v1094_v14 = vpack.c.b16 %v1090_v51, %v1089_v8 }
 0x295   :  { %2052 = vmatmul.msk.bf16.gmra.mxu3 %vm396_vm1, %v2410_v12 }
 0x296   :  { %1103 = vmatpush.bf16.msra.mxu1 %v1094_v14 }
 0x297   :  { %v950_v20 = vpop.f32.mrf.mxu2 }
 0x298   :  { %v1006_v52 = vpack.c.bf16 %v950_v20, %v950_v20 }
 0x29a   :  { %1104 = vmatpush.bf16.msra.mxu1 %v1093_v26  ;;  %v1136_v58 = vunpack.c.l.b16 %v1006_v52 }
 0x29e   :  { %1105 = vmatpush.bf16.msra.mxu1 %v1092_v31 }
 0x29f   :  { %v952_v33 = vpop.f32.mrf.mxu2 }
 0x2a0   :  { %v1007_v48 = vpack.c.bf16 %v952_v33, %v952_v33 }
 0x2a2   :  { %1106 = vmatpush.bf16.msra.mxu1 %v1091_v34  ;;  %v1137_v56 = vunpack.c.l.b16 %v1007_v48 }
 0x2a4   :  { %v1144_v47 = vpack.c.b16 %v1137_v56, %v1136_v58 }
 0x2a5   :  { %2053 = vmatmul.msk.bf16.vlgmr.msra.gmra.mxu1 %vm396_vm1, %v2417_v16 }
 0x2a7   :  { %v955_v12 = vpop.f32.mrf.mxu2 }
 0x2af   :  { %v957_v35 = vpop.f32.mrf.mxu2 }
 0x2b0   :  { %v1009_v42 = vpack.c.bf16 %v957_v35, %v957_v35 }
 0x2b5   :  { %2054 = vmatmul.msk.bf16.gmra.mxu1 %vm396_vm1, %v2424_v19  ;;  %v1008_v19 = vpack.c.bf16 %v955_v12, %v955_v12 }
 0x2b7   :  { %v960_v36 = vpop.f32.mrf.mxu2  ;;  %v1138_v54 = vunpack.c.l.b16 %v1008_v19 }
 0x2b8   :  { %v1010_v40 = vpack.c.bf16 %v960_v36, %v960_v36 }
 0x2ba   :  { %v1140_v44 = vunpack.c.l.b16 %v1010_v40 }
 0x2bf   :  { %v962_v23 = vpop.f32.mrf.mxu2 }
 0x2c0   :  { %v1011_v38 = vpack.c.bf16 %v962_v23, %v962_v23 }
 0x2c2   :  { %v1141_v16 = vunpack.c.l.b16 %v1011_v38 }
 0x2c4   :  { %v1146_v50 = vpack.c.b16 %v1141_v16, %v1140_v44 }
 0x2c5   :  { %2055 = vmatmul.msk.bf16.gmra.mxu1 %vm396_vm1, %v2431_v22  ;;  %v1139_v22 = vunpack.c.l.b16 %v1009_v42 }
 0x2c7   :  { %v965_v21 = vpop.f32.mrf.mxu2  ;;  %v1145_v57 = vpack.c.b16 %v1139_v22, %v1138_v54 }
 0x2c8   :  { %v1012_v37 = vpack.c.bf16 %v965_v21, %v965_v21 }
 0x2ca   :  { %v1142_v9 = vunpack.c.l.b16 %v1012_v37 }
 0x2cf   :  { %v967_v17 = vpop.f32.mrf.mxu2 }
 0x2d0   :  { %v1013_v39 = vpack.c.bf16 %v967_v17, %v967_v17 }
 0x2d2   :  { %v1143_v41 = vunpack.c.l.b16 %v1013_v39 }
 0x2d4   :  { %v1147_v43 = vpack.c.b16 %v1143_v41, %v1142_v9 }
 0x2d5   :  { %2056 = vmatmul.msk.bf16.gmra.mxu1 %vm396_vm1, %v2438_v28 }
 0x2d6   :  { %1156 = vmatpush.bf16.msrb.mxu3 %v1147_v43 }
 0x2d7   :  { %v970_v45 = vpop.f32.mrf.mxu2 }
 0x2d8   :  { %v1014_v29 = vpack.c.bf16 %v970_v45, %v970_v45 }
 0x2da   :  { %1157 = vmatpush.bf16.msrb.mxu3 %v1146_v50  ;;  %v1189_v12 = vunpack.c.l.b16 %v1014_v29 }
 0x2de   :  { %1158 = vmatpush.bf16.msrb.mxu3 %v1145_v57 }
 0x2df   :  { %v972_v59 = vpop.f32.mrf.mxu2 }
 0x2e0   :  { %v1015_v30 = vpack.c.bf16 %v972_v59, %v972_v59 }
 0x2e2   :  { %1159 = vmatpush.bf16.msrb.mxu3 %v1144_v47  ;;  %v1190_v35 = vunpack.c.l.b16 %v1015_v30 }
 0x2e4   :  { %v1197_v17 = vpack.c.b16 %v1190_v35, %v1189_v12 }
 0x2e5   :  { %2057 = vmatmul.msk.bf16.vlgmr.msrb.gmra.mxu3 %vm396_vm1, %v2445_v49 }
 0x2e6   :  { %1448 = vmatpush.bf16.msra.mxu3 %v2142_v62 }
 0x2e7   :  { %v975_v28 = vpop.f32.mrf.mxu2 }
 0x2e8   :  { %v1055_v3 = vpop.f32.mrf.mxu3  ;;  %v1016_v20 = vpack.c.bf16 %v975_v28, %v975_v28 }
 0x2ea   :  { %1449 = vmatpush.bf16.msra.mxu3 %v2141_v1  ;;  %v1191_v31 = vunpack.c.l.b16 %v1016_v20 }
 0x2ef   :  { %v977_v61 = vpop.f32.mrf.mxu2 }
 0x2f0   :  { %v1057_v5 = vpop.f32.mrf.mxu3  ;;  %v1017_v24 = vpack.c.bf16 %v977_v61, %v977_v61 }
 0x2f1   :  { %v1235_v27 = vmax.f32 %v1057_v5, 0.0 }
 0x2f2   :  { %v1192_v32 = vunpack.c.l.b16 %v1017_v24 }
 0x2f3   :  { %v1267_v34 = vpack.c.bf16 %v1235_v27, %v1235_v27 }
 0x2f4   :  { %v1198_v36 = vpack.c.b16 %v1192_v32, %v1191_v31 }
 0x2f5   :  { %2058 = vmatmul.msk.bf16.gmra.mxu3 %vm396_vm1, %v2452_v53  ;;  %v1335_v37 = vunpack.c.l.b16 %v1267_v34 }
 0x2f7   :  { %v980_v63 = vpop.f32.mrf.mxu2 }
 0x2f8   :  { %v1018_v53 = vpack.c.bf16 %v980_v63, %v980_v63  ;;  %v1060_v13 = vpop.f32.mrf.mxu3 }
 0x2f9   :  { %v1236_v39 = vmax.f32 %v1060_v13, 0.0 }
 0x2fa   :  { %v1193_v14 = vunpack.c.l.b16 %v1018_v53 }
 0x2fb   :  { %v1268_v9 = vpack.c.bf16 %v1236_v39, %v1236_v39 }
 0x2fd   :  { %v1336_v42 = vunpack.c.l.b16 %v1268_v9 }
 0x2ff   :  { %v982_v4 = vpop.f32.mrf.mxu2 }
 0x300   :  { %v1019_v7 = vpack.c.bf16 %v982_v4, %v982_v4  ;;  %v1062_v23 = vpop.f32.mrf.mxu3 }
 0x301   :  { %v1237_v40 = vmax.f32 %v1062_v23, 0.0 }
 0x302   :  { %v1194_v15 = vunpack.c.l.b16 %v1019_v7 }
 0x303   :  { %v1269_v41 = vpack.c.bf16 %v1237_v40, %v1237_v40 }
 0x304   :  { %v1199_v26 = vpack.c.b16 %v1194_v15, %v1193_v14 }
 0x305   :  { %2059 = vmatmul.msk.bf16.gmra.mxu3 %vm396_vm1, %v2465_v60  ;;  %v1234_v60 = vmax.f32 %v1055_v3, 0.0  ;;  %v1337_v16 = vunpack.c.l.b16 %v1269_v41 }
 0x307   :  { %v985_v49 = vpop.f32.mrf.mxu2  ;;  %v1266_v33 = vpack.c.bf16 %v1234_v60, %v1234_v60  ;;  %v1367_v19 = vpack.c.b16 %v1337_v16, %v1336_v42 }
 0x308   :  { %v1020_v6 = vpack.c.bf16 %v985_v49, %v985_v49  ;;  %v1065_v38 = vpop.f32.mrf.mxu3 }
 0x309   :  { %v1334_v21 = vunpack.c.l.b16 %v1266_v33  ;;  %v1238_v44 = vmax.f32 %v1065_v38, 0.0 }
 0x30a   :  { %v1195_v51 = vunpack.c.l.b16 %v1020_v6 }
 0x30b   :  { %v1270_v22 = vpack.c.bf16 %v1238_v44, %v1238_v44 }
 0x30d   :  { %v1338_v52 = vunpack.c.l.b16 %v1270_v22 }
 0x30f   :  { %v987_v8 = vpop.f32.mrf.mxu2 }
 0x310   :  { %v1021_v10 = vpack.c.bf16 %v987_v8, %v987_v8  ;;  %v1067_v43 = vpop.f32.mrf.mxu3 }
 0x311   :  { %v1239_v45 = vmax.f32 %v1067_v43, 0.0 }
 0x312   :  { %v1196_v18 = vunpack.c.l.b16 %v1021_v10 }
 0x313   :  { %v1271_v50 = vpack.c.bf16 %v1239_v45, %v1239_v45 }
 0x314   :  { %v1200_v55 = vpack.c.b16 %v1196_v18, %v1195_v51 }
 0x315   :  { %2060 = vmatmul.msk.bf16.gmra.mxu3 %vm396_vm1, %v2472_v2  ;;  %v1366_v2 = vpack.c.b16 %v1335_v37, %v1334_v21  ;;  %v1339_v54 = vunpack.c.l.b16 %v1271_v50 }
 0x316   :  { %1209 = vmatpush.bf16.msrb.mxu1 %v1200_v55 }
 0x317   :  { %v1368_v56 = vpack.c.b16 %v1339_v54, %v1338_v52 }
 0x318   :  { %v1070_v48 = vpop.f32.mrf.mxu3 }
 0x319   :  { %v1240_v58 = vmax.f32 %v1070_v48, 0.0 }
 0x31a   :  { %1210 = vmatpush.bf16.msrb.mxu1 %v1199_v26 }
 0x31b   :  { %v1272_v28 = vpack.c.bf16 %v1240_v58, %v1240_v58 }
 0x31d   :  { %v1340_v61 = vunpack.c.l.b16 %v1272_v28 }
 0x31e   :  { %1211 = vmatpush.bf16.msrb.mxu1 %v1198_v36 }
 0x320   :  { %v1072_v57 = vpop.f32.mrf.mxu3 }
 0x321   :  { %v1241_v59 = vmax.f32 %v1072_v57, 0.0 }
 0x322   :  { %1212 = vmatpush.bf16.msrb.mxu1 %v1197_v17 }
 0x325   :  { %2073 = vmatmul.msk.bf16.vlgmr.msra.gmra.mxu3 %vm182_vm0, %v1366_v2  ;;  %2061 = vmatmul.msk.bf16.vlgmr.msrb.gmra.mxu1 %vm396_vm1, %v2481_v46  ;;  %v1108_v46 = vpop.f32.mrf.mxu1 }
 0x326   :  { %v1242_v3 = vmax.f32 %v1108_v46, 0.0 }
 0x328   :  { %v1274_v49 = vpack.c.bf16 %v1242_v3, %v1242_v3 }
 0x32d   :  { %v1110_v47 = vpop.f32.mrf.mxu1 }
 0x32e   :  { %v1243_v4 = vmax.f32 %v1110_v47, 0.0 }
 0x330   :  { %v1275_v5 = vpack.c.bf16 %v1243_v4, %v1243_v4 }
 0x332   :  { %v1343_v53 = vunpack.c.l.b16 %v1275_v5 }
 0x335   :  { %2074 = vmatmul.msk.bf16.gmra.mxu3 %vm182_vm0, %v1367_v19  ;;  %2062 = vmatmul.msk.bf16.gmra.mxu1 %vm396_vm1, %v2489_v0  ;;  %v1273_v0 = vpack.c.bf16 %v1241_v59, %v1241_v59  ;;  %v1113_v63 = vpop.f32.mrf.mxu1 }
 0x336   :  { %v1244_v51 = vmax.f32 %v1113_v63, 0.0 }
 0x337   :  { %v1341_v62 = vunpack.c.l.b16 %v1273_v0 }
 0x338   :  { %v1276_v14 = vpack.c.bf16 %v1244_v51, %v1244_v51 }
 0x339   :  { %v1369_v1 = vpack.c.b16 %v1341_v62, %v1340_v61 }
 0x33a   :  { %v1344_v18 = vunpack.c.l.b16 %v1276_v14 }
 0x33d   :  { %v1115_v6 = vpop.f32.mrf.mxu1 }
 0x33e   :  { %v1245_v10 = vmax.f32 %v1115_v6, 0.0 }
 0x340   :  { %v1277_v15 = vpack.c.bf16 %v1245_v10, %v1245_v10 }
 0x342   :  { %v1345_v20 = vunpack.c.l.b16 %v1277_v15 }
 0x344   :  { %v1371_v55 = vpack.c.b16 %v1345_v20, %v1344_v18 }
 0x345   :  { %2075 = vmatmul.msk.bf16.gmra.mxu3 %vm182_vm0, %v1368_v56  ;;  %2063 = vmatmul.msk.bf16.gmra.mxu1 %vm396_vm1, %v2497_v11  ;;  %v1342_v11 = vunpack.c.l.b16 %v1274_v49  ;;  %v1118_v8 = vpop.f32.mrf.mxu1 }
 0x346   :  { %v1246_v26 = vmax.f32 %v1118_v8, 0.0 }
 0x347   :  { %v1370_v7 = vpack.c.b16 %v1343_v53, %v1342_v11 }
 0x348   :  { %v1278_v30 = vpack.c.bf16 %v1246_v26, %v1246_v26 }
 0x34a   :  { %v1346_v32 = vunpack.c.l.b16 %v1278_v30 }
 0x355   :  { %2076 = vmatmul.msk.bf16.gmra.mxu3 %vm182_vm0, %v1369_v1  ;;  %2064 = vmatmul.msk.bf16.gmra.mxu1 %vm396_vm1, %v2505_v25  ;;  %v1120_v25 = vpop.f32.mrf.mxu1 }
 0x356   :  { %v1247_v60 = vmax.f32 %v1120_v25, 0.0 }
 0x358   :  { %v1279_v31 = vpack.c.bf16 %v1247_v60, %v1247_v60 }
 0x35a   :  { %v1347_v33 = vunpack.c.l.b16 %v1279_v31 }
 0x35c   :  { %v1372_v12 = vpack.c.b16 %v1347_v33, %v1346_v32 }
 0x35d   :  { %v1123_v29 = vpop.f32.mrf.mxu1 }
 0x35e   :  { %v1248_v36 = vmax.f32 %v1123_v29, 0.0 }
 0x360   :  { %v1280_v37 = vpack.c.bf16 %v1248_v36, %v1248_v36 }
 0x362   :  { %v1348_v2 = vunpack.c.l.b16 %v1280_v37 }
 0x365   :  { %2077 = vmatmul.msk.bf16.gmra.mxu3 %vm182_vm0, %v1370_v7  ;;  %v1125_v35 = vpop.f32.mrf.mxu1 }
 0x366   :  { %v1249_v23 = vmax.f32 %v1125_v35, 0.0 }
 0x368   :  { %v1161_v13 = vpop.f32.mrf.mxu3  ;;  %v1281_v17 = vpack.c.bf16 %v1249_v23, %v1249_v23 }
 0x369   :  { %v1250_v42 = vmax.f32 %v1161_v13, 0.0 }
 0x36a   :  { %v1349_v38 = vunpack.c.l.b16 %v1281_v17 }
 0x36b   :  { %v1282_v43 = vpack.c.bf16 %v1250_v42, %v1250_v42 }
 0x36c   :  { %v1373_v40 = vpack.c.b16 %v1349_v38, %v1348_v2 }
 0x36d   :  { %v1350_v45 = vunpack.c.l.b16 %v1282_v43 }
 0x370   :  { %v1163_v24 = vpop.f32.mrf.mxu3 }
 0x371   :  { %v1251_v9 = vmax.f32 %v1163_v24, 0.0 }
 0x373   :  { %v1283_v16 = vpack.c.bf16 %v1251_v9, %v1251_v9 }
 0x375   :  { %2078 = vmatmul.msk.bf16.gmra.mxu3 %vm182_vm0, %v1371_v55  ;;  %v1351_v19 = vunpack.c.l.b16 %v1283_v16 }
 0x377   :  { %v1374_v48 = vpack.c.b16 %v1351_v19, %v1350_v45 }
 0x378   :  { %v1166_v27 = vpop.f32.mrf.mxu3 }
 0x379   :  { %v1252_v46 = vmax.f32 %v1166_v27, 0.0 }
 0x37b   :  { %v1284_v54 = vpack.c.bf16 %v1252_v46, %v1252_v46 }
 0x37d   :  { %v1352_v58 = vunpack.c.l.b16 %v1284_v54 }
 0x380   :  { %v1168_v34 = vpop.f32.mrf.mxu3 }
 0x381   :  { %v1253_v22 = vmax.f32 %v1168_v34, 0.0 }
 0x383   :  { %v1285_v52 = vpack.c.bf16 %v1253_v22, %v1253_v22 }
 0x385   :  { %2079 = vmatmul.msk.bf16.gmra.mxu3 %vm182_vm0, %v1372_v12  ;;  %v1353_v56 = vunpack.c.l.b16 %v1285_v52 }
 0x387   :  { %v1375_v59 = vpack.c.b16 %v1353_v56, %v1352_v58 }
 0x388   :  { %v1171_v21 = vpop.f32.mrf.mxu3 }
 0x389   :  { %v1254_v0 = vmax.f32 %v1171_v21, 0.0 }
 0x38b   :  { %v1286_v62 = vpack.c.bf16 %v1254_v0, %v1254_v0 }
 0x38d   :  { %v1354_v4 = vunpack.c.l.b16 %v1286_v62 }
 0x390   :  { %v1173_v39 = vpop.f32.mrf.mxu3 }
 0x391   :  { %v1255_v47 = vmax.f32 %v1173_v39, 0.0 }
 0x393   :  { %v1287_v61 = vpack.c.bf16 %v1255_v47, %v1255_v47 }
 0x395   :  { %2080 = vmatmul.msk.bf16.gmra.mxu3 %vm182_vm0, %v1373_v40  ;;  %v1355_v1 = vunpack.c.l.b16 %v1287_v61 }
 0x397   :  { %v1376_v49 = vpack.c.b16 %v1355_v1, %v1354_v4 }
 0x398   :  { %v1176_v41 = vpop.f32.mrf.mxu3 }
 0x399   :  { %v1256_v53 = vmax.f32 %v1176_v41, 0.0 }
 0x39b   :  { %v1288_v8 = vpack.c.bf16 %v1256_v53, %v1256_v53 }
 0x39d   :  { %v1356_v13 = vunpack.c.l.b16 %v1288_v8 }
 0x3a0   :  { %v1178_v44 = vpop.f32.mrf.mxu3 }
 0x3a1   :  { %v1257_v5 = vmax.f32 %v1178_v44, 0.0 }
 0x3a2   :  { %v1214_v63 = vpop.f32.mrf.mxu1 }
 0x3a3   :  { %v1289_v7 = vpack.c.bf16 %v1257_v5, %v1257_v5  ;;  %v1258_v18 = vmax.f32 %v1214_v63, 0.0  ;;  %v2242_v5 = vld [vmem:[%s2657_s0 + $0x8] sm:$0xff] }
 0x3a5   :  { %2081 = vmatmul.msk.bf16.gmra.mxu3 %vm182_vm0, %v1374_v48  ;;  %v1357_v51 = vunpack.c.l.b16 %v1289_v7  ;;  %v1290_v25 = vpack.c.bf16 %v1258_v18, %v1258_v18 }
 0x3a7   :  { %v1377_v15 = vpack.c.b16 %v1357_v51, %v1356_v13  ;;  %v1358_v60 = vunpack.c.l.b16 %v1290_v25 }
 0x3a8   :  { %v2575_v50 = vpop.f32.mrf.mxu3 }
 0x3a9   :  { %v1531_v16 = vpack.c.bf16 %v2575_v50, %v2575_v50  ;;  %v2241_v50 = vld [vmem:[%s2657_s0] sm:$0xff] }
 0x3aa   :  { %v1216_v11 = vpop.f32.mrf.mxu1 }
 0x3ab   :  { %v1259_v20 = vmax.f32 %v1216_v11, 0.0  ;;  %v1571_v22 = vunpack.c.l.b16 %v1531_v16 }
 0x3ad   :  { %v1291_v55 = vpack.c.bf16 %v1259_v20, %v1259_v20 }
 0x3af   :  { %v1359_v29 = vunpack.c.l.b16 %v1291_v55 }
 0x3b0   :  { %v1453_v57 = vpop.f32.mrf.mxu3 }
 0x3b1   :  { %v1378_v12 = vpack.c.b16 %v1359_v29, %v1358_v60  ;;  %v1532_v9 = vpack.c.bf16 %v1453_v57, %v1453_v57 }
 0x3b2   :  { %v1219_v14 = vpop.f32.mrf.mxu1 }
 0x3b3   :  { %v1260_v38 = vmax.f32 %v1219_v14, 0.0  ;;  %v1572_v45 = vunpack.c.l.b16 %v1532_v9 }
 0x3b5   :  { %2082 = vmatmul.msk.bf16.gmra.mxu3 %vm182_vm0, %v1375_v59  ;;  %v1292_v19 = vpack.c.bf16 %v1260_v38, %v1260_v38  ;;  %v1579_v58 = vpack.c.b16 %v1572_v45, %v1571_v22 }
 0x3b7   :  { %v1360_v46 = vunpack.c.l.b16 %v1292_v19 }
 0x3b8   :  { %v1456_v28 = vpop.f32.mrf.mxu3 }
 0x3b9   :  { %v1533_v17 = vpack.c.bf16 %v1456_v28, %v1456_v28 }
 0x3ba   :  { %v1221_v26 = vpop.f32.mrf.mxu1 }
 0x3bb   :  { %v1261_v39 = vmax.f32 %v1221_v26, 0.0  ;;  %v1573_v43 = vunpack.c.l.b16 %v1533_v17 }
 0x3bd   :  { %v1293_v44 = vpack.c.bf16 %v1261_v39, %v1261_v39 }
 0x3bf   :  { %v1361_v52 = vunpack.c.l.b16 %v1293_v44  ;;  %v2247_v44 = vld [vmem:[%s2657_s0 + $0x30] sm:$0xff] }
 0x3c0   :  { %v1458_v3 = vpop.f32.mrf.mxu3 }
 0x3c1   :  { %v1534_v36 = vpack.c.bf16 %v1458_v3, %v1458_v3  ;;  %v1379_v59 = vpack.c.b16 %v1361_v52, %v1360_v46 }
 0x3c2   :  { %v1224_v37 = vpop.f32.mrf.mxu1 }
 0x3c3   :  { %v1574_v41 = vunpack.c.l.b16 %v1534_v36  ;;  %v1262_v57 = vmax.f32 %v1224_v37, 0.0 }
 0x3c5   :  { %2083 = vmatmul.msk.bf16.gmra.mxu3 %vm182_vm0, %v1376_v49  ;;  %v1580_v48 = vpack.c.b16 %v1574_v41, %v1573_v43  ;;  %v1294_v61 = vpack.c.bf16 %v1262_v57, %v1262_v57  ;;  %v2245_v41 = vld [vmem:[%s2657_s0 + $0x20] sm:$0xff] }
 0x3c7   :  { %v1362_v63 = vunpack.c.l.b16 %v1294_v61 }
 0x3c8   :  { %v1461_v6 = vpop.f32.mrf.mxu3 }
 0x3c9   :  { %v1535_v33 = vpack.c.bf16 %v1461_v6, %v1461_v6 }
 0x3ca   :  { %v1226_v56 = vpop.f32.mrf.mxu1 }
 0x3cb   :  { %v1575_v2 = vunpack.c.l.b16 %v1535_v33  ;;  %v1263_v47 = vmax.f32 %v1226_v56, 0.0 }
 0x3cd   :  { %v1295_v62 = vpack.c.bf16 %v1263_v47, %v1263_v47  ;;  %v2248_v47 = vld [vmem:[%s2657_s0 + $0x38] sm:$0xff] }
 0x3cf   :  { %v1363_v1 = vunpack.c.l.b16 %v1295_v62 }
 0x3d0   :  { %v1463_v10 = vpop.f32.mrf.mxu3 }
 0x3d1   :  { %v1536_v31 = vpack.c.bf16 %v1463_v10, %v1463_v10  ;;  %v1380_v4 = vpack.c.b16 %v1363_v1, %v1362_v63 }
 0x3d2   :  { %v1229_v0 = vpop.f32.mrf.mxu1 }
 0x3d3   :  { %v1576_v23 = vunpack.c.l.b16 %v1536_v31  ;;  %v1264_v6 = vmax.f32 %v1229_v0, 0.0 }
 0x3d5   :  { %2084 = vmatmul.msk.bf16.gmra.mxu3 %vm182_vm0, %v1377_v15  ;;  %v1581_v42 = vpack.c.b16 %v1576_v23, %v1575_v2  ;;  %v1296_v7 = vpack.c.bf16 %v1264_v6, %v1264_v6  ;;  %v2243_v15 = vld [vmem:[%s2657_s0 + $0x10] sm:$0xff] }
 0x3d7   :  { %v1364_v51 = vunpack.c.l.b16 %v1296_v7  ;;  %v2249_v7 = vld [vmem:[%s2657_s0 + $0x40] sm:$0xff] }
 0x3d8   :  { %v1466_v24 = vpop.f32.mrf.mxu3 }
 0x3d9   :  { %v1537_v27 = vpack.c.bf16 %v1466_v24, %v1466_v24 }
 0x3da   :  { %v1231_v49 = vpop.f32.mrf.mxu1 }
 0x3db   :  { %v1577_v34 = vunpack.c.l.b16 %v1537_v27  ;;  %v1265_v11 = vmax.f32 %v1231_v49, 0.0 }
 0x3dd   :  { %v1297_v8 = vpack.c.bf16 %v1265_v11, %v1265_v11 }
 0x3df   :  { %v1365_v10 = vunpack.c.l.b16 %v1297_v8 }
 0x3e0   :  { %v1468_v30 = vpop.f32.mrf.mxu3 }
 0x3e1   :  { %v1538_v32 = vpack.c.bf16 %v1468_v30, %v1468_v30  ;;  %v1381_v14 = vpack.c.b16 %v1365_v10, %v1364_v51  ;;  %v2250_v10 = vld [vmem:[%s2657_s0 + $0x48] sm:$0xff] }
 0x3e3   :  { %v1578_v35 = vunpack.c.l.b16 %v1538_v32  ;;  %v2244_v32 = vld [vmem:[%s2657_s0 + $0x18] sm:$0xff] }
 0x3e5   :  { %2085 = vmatmul.msk.bf16.gmra.mxu3 %vm182_vm0, %v1378_v12  ;;  %v1582_v21 = vpack.c.b16 %v1578_v35, %v1577_v34 }
 0x3e7   :  { %1591 = vmatpush.bf16.msrb.mxu0 %v1582_v21 }
 0x3e8   :  { %v2581_v40 = vpop.f32.mrf.mxu3 }
 0x3e9   :  { %v1539_v21 = vpack.c.bf16 %v2581_v40, %v2581_v40  ;;  %v2246_v40 = vld [vmem:[%s2657_s0 + $0x28] sm:$0xff] }
 0x3eb   :  { %1592 = vmatpush.bf16.msrb.mxu0 %v1581_v42  ;;  %v1624_v38 = vunpack.c.l.b16 %v1539_v21 }
 0x3ef   :  { %1593 = vmatpush.bf16.msrb.mxu0 %v1580_v48 }
 0x3f0   :  { %v1473_v54 = vpop.f32.mrf.mxu3 }
 0x3f1   :  { %v1540_v35 = vpack.c.bf16 %v1473_v54, %v1473_v54 }
 0x3f3   :  { %1594 = vmatpush.bf16.msrb.mxu0 %v1579_v58  ;;  %v1625_v17 = vunpack.c.l.b16 %v1540_v35 }
 0x3f5   :  { %2086 = vmatmul.msk.bf16.gmra.mxu3 %vm182_vm0, %v1379_v59  ;;  %v1632_v9 = vpack.c.b16 %v1625_v17, %v1624_v38 }
 0x3f6   :  { %2089 = vmatmul.msk.bf16.vlgmr.msrb.gmra.mxu0 %vm396_vm1, %v2241_v50 }
 0x3f8   :  { %v1476_v28 = vpop.f32.mrf.mxu3 }
 0x3f9   :  { %v1541_v33 = vpack.c.bf16 %v1476_v28, %v1476_v28 }
 0x3fb   :  { %v1626_v37 = vunpack.c.l.b16 %v1541_v33 }
 0x400   :  { %v1478_v3 = vpop.f32.mrf.mxu3 }
 0x401   :  { %v1542_v29 = vpack.c.bf16 %v1478_v3, %v1478_v3 }
 0x403   :  { %v1627_v36 = vunpack.c.l.b16 %v1542_v29 }
 0x405   :  { %2087 = vmatmul.msk.bf16.gmra.mxu3 %vm182_vm0, %v1380_v4  ;;  %v1633_v2 = vpack.c.b16 %v1627_v36, %v1626_v37 }
 0x406   :  { %2090 = vmatmul.msk.bf16.gmra.mxu0 %vm396_vm1, %v2242_v5 }
 0x408   :  { %v1481_v53 = vpop.f32.mrf.mxu3 }
 0x409   :  { %v1543_v26 = vpack.c.bf16 %v1481_v53, %v1481_v53 }
 0x40b   :  { %v1628_v34 = vunpack.c.l.b16 %v1543_v26 }
 0x410   :  { %v1483_v13 = vpop.f32.mrf.mxu3 }
 0x411   :  { %v1544_v25 = vpack.c.bf16 %v1483_v13, %v1483_v13 }
 0x413   :  { %v1629_v30 = vunpack.c.l.b16 %v1544_v25 }
 0x415   :  { %2088 = vmatmul.msk.bf16.gmra.mxu3 %vm182_vm0, %v1381_v14  ;;  %v1634_v23 = vpack.c.b16 %v1629_v30, %v1628_v34 }
 0x416   :  { %2091 = vmatmul.msk.bf16.gmra.mxu0 %vm396_vm1, %v2243_v15  ;;  %v2251_v15 = vld [vmem:[%s2657_s0 + $0x50] sm:$0xff] }
 0x418   :  { %v1486_v18 = vpop.f32.mrf.mxu3 }
 0x419   :  { %v1545_v20 = vpack.c.bf16 %v1486_v18, %v1486_v18 }
 0x41b   :  { %v1630_v60 = vunpack.c.l.b16 %v1545_v20 }
 0x420   :  { %v1488_v24 = vpop.f32.mrf.mxu3 }
 0x421   :  { %v1546_v55 = vpack.c.bf16 %v1488_v24, %v1488_v24 }
 0x423   :  { %v1631_v27 = vunpack.c.l.b16 %v1546_v55 }
 0x425   :  { %v1635_v31 = vpack.c.b16 %v1631_v27, %v1630_v60 }
 0x426   :  { %2092 = vmatmul.msk.bf16.gmra.mxu0 %vm396_vm1, %v2244_v32  ;;  %v2252_v32 = vld [vmem:[%s2657_s0 + $0x58] sm:$0xff] }
 0x427   :  { %1644 = vmatpush.bf16.msra.mxu1 %v1635_v31 }
 0x428   :  { %v1491_v12 = vpop.f32.mrf.mxu3 }
 0x429   :  { %v1547_v3 = vpack.c.bf16 %v1491_v12, %v1491_v12 }
 0x42b   :  { %1645 = vmatpush.bf16.msra.mxu1 %v1634_v23  ;;  %v1677_v6 = vunpack.c.l.b16 %v1547_v3 }
 0x42f   :  { %1646 = vmatpush.bf16.msra.mxu1 %v1633_v2 }
 0x430   :  { %v1493_v39 = vpop.f32.mrf.mxu3 }
 0x431   :  { %v1548_v62 = vpack.c.bf16 %v1493_v39, %v1493_v39  ;;  %v2253_v39 = vld [vmem:[%s2657_s0 + $0x60] sm:$0xff] }
 0x433   :  { %1647 = vmatpush.bf16.msra.mxu1 %v1632_v9  ;;  %v1678_v49 = vunpack.c.l.b16 %v1548_v62  ;;  %v2254_v9 = vld [vmem:[%s2657_s0 + $0x68] sm:$0xff] }
 0x435   :  { %v1685_v53 = vpack.c.b16 %v1678_v49, %v1677_v6 }
 0x436   :  { %2093 = vmatmul.msk.bf16.vlgmr.msra.gmra.mxu1 %vm396_vm1, %v2245_v41 }
 0x438   :  { %v1496_v42 = vpop.f32.mrf.mxu3 }
 0x439   :  { %v1549_v28 = vpack.c.bf16 %v1496_v42, %v1496_v42 }
 0x43b   :  { %v1679_v4 = vunpack.c.l.b16 %v1549_v28 }
 0x440   :  { %v1498_v16 = vpop.f32.mrf.mxu3 }
 0x441   :  { %v1550_v59 = vpack.c.bf16 %v1498_v16, %v1498_v16 }
 0x443   :  { %v1680_v63 = vunpack.c.l.b16 %v1550_v59 }
 0x445   :  { %v1686_v5 = vpack.c.b16 %v1680_v63, %v1679_v4 }
 0x446   :  { %2094 = vmatmul.msk.bf16.gmra.mxu1 %vm396_vm1, %v2246_v40 }
 0x448   :  { %v1501_v43 = vpop.f32.mrf.mxu3 }
 0x449   :  { %v1551_v54 = vpack.c.bf16 %v1501_v43, %v1501_v43 }
 0x44b   :  { %v1681_v0 = vunpack.c.l.b16 %v1551_v54 }
 0x450   :  { %v1503_v19 = vpop.f32.mrf.mxu3 }
 0x451   :  { %v1552_v46 = vpack.c.bf16 %v1503_v19, %v1503_v19 }
 0x453   :  { %v1682_v50 = vunpack.c.l.b16 %v1552_v46 }
 0x455   :  { %v1687_v1 = vpack.c.b16 %v1682_v50, %v1681_v0 }
 0x456   :  { %2095 = vmatmul.msk.bf16.gmra.mxu1 %vm396_vm1, %v2247_v44  ;;  %v2255_v44 = vld [vmem:[%s2657_s0 + $0x70] sm:$0xff] }
 0x458   :  { %v1506_v45 = vpop.f32.mrf.mxu3 }
 0x459   :  { %v1553_v48 = vpack.c.bf16 %v1506_v45, %v1506_v45 }
 0x45b   :  { %v1683_v56 = vunpack.c.l.b16 %v1553_v48 }
 0x460   :  { %v1508_v22 = vpop.f32.mrf.mxu3 }
 0x461   :  { %v1554_v52 = vpack.c.bf16 %v1508_v22, %v1508_v22 }
 0x463   :  { %v1684_v58 = vunpack.c.l.b16 %v1554_v52 }
 0x465   :  { %v1688_v57 = vpack.c.b16 %v1684_v58, %v1683_v56  ;;  %v2256_v56 = vld [vmem:[%s2657_s0 + $0x78] sm:$0xff]  ;;  %s2283_s0 = smov [#allocation2]  }
 0x466   :  { %2096 = vmatmul.msk.bf16.gmra.mxu1 %vm396_vm1, %v2248_v47  ;;  %s1843_s15 = sshll.u32 %s2283_s0, 4  ;;  %s1844_s15 = int_to_ptr.vmem [resolvable:$true] %s1843_s15 }
 0x467   :  { %1697 = vmatpush.bf16.msra.mxu0 %v1688_v57 }
 0x468   :  { %v1511_v61 = vpop.f32.mrf.mxu3 }
 0x469   :  { %v1555_v23 = vpack.c.bf16 %v1511_v61, %v1511_v61 }
 0x46b   :  { %1698 = vmatpush.bf16.msra.mxu0 %v1687_v1  ;;  %v1730_v2 = vunpack.c.l.b16 %v1555_v23 }
 0x46f   :  { %1699 = vmatpush.bf16.msra.mxu0 %v1686_v5 }
 0x470   :  { %v1513_v11 = vpop.f32.mrf.mxu3 }
 0x471   :  { %v1556_v12 = vpack.c.bf16 %v1513_v11, %v1513_v11 }
 0x473   :  { %1700 = vmatpush.bf16.msra.mxu0 %v1685_v53  ;;  %v1731_v37 = vunpack.c.l.b16 %v1556_v12  ;;  %v1596_v41 = vpop.f32.mrf.mxu0 }
 0x475   :  { %v1738_v38 = vpack.c.b16 %v1731_v37, %v1730_v2 }
 0x476   :  { %2097 = vmatmul.msk.bf16.vlgmr.msra.gmra.mxu0 %vm396_vm1, %v2249_v7 }
 0x478   :  { %v1516_v8 = vpop.f32.mrf.mxu3 }
 0x479   :  { %v1557_v33 = vpack.c.bf16 %v1516_v8, %v1516_v8 }
 0x47b   :  { %v1732_v21 = vunpack.c.l.b16 %v1557_v33  ;;  %v1598_v16 = vpop.f32.mrf.mxu0 }
 0x47c   :  { %v2146_v43 = vpack.c.bf16 %v1598_v16, %v1596_v41 }
 0x47e   :  { %2147 = vst [vmem:[#allocation2] sm:$0xff] %v2146_v43  }
 0x480   :  { %v1518_v51 = vpop.f32.mrf.mxu3 }
 0x481   :  { %v1558_v29 = vpack.c.bf16 %v1518_v51, %v1518_v51 }
 0x483   :  { %v1733_v35 = vunpack.c.l.b16 %v1558_v29  ;;  %v1601_v45 = vpop.f32.mrf.mxu0 }
 0x485   :  { %v1739_v17 = vpack.c.b16 %v1733_v35, %v1732_v21 }
 0x486   :  { %2098 = vmatmul.msk.bf16.gmra.mxu0 %vm396_vm1, %v2250_v10 }
 0x488   :  { %v1521_v13 = vpop.f32.mrf.mxu3 }
 0x489   :  { %v1559_v26 = vpack.c.bf16 %v1521_v13, %v1521_v13 }
 0x48b   :  { %v1734_v34 = vunpack.c.l.b16 %v1559_v26  ;;  %v1603_v22 = vpop.f32.mrf.mxu0 }
 0x48c   :  { %v2151_v52 = vpack.c.bf16 %v1603_v22, %v1601_v45 }
 0x48e   :  { %2223 = vst [vmem:[#allocation2 + $0x8] sm:$0xff] %v2151_v52  }
 0x490   :  { %v1523_v14 = vpop.f32.mrf.mxu3 }
 0x491   :  { %v1560_v25 = vpack.c.bf16 %v1523_v14, %v1523_v14 }
 0x493   :  { %v1735_v30 = vunpack.c.l.b16 %v1560_v25  ;;  %v1606_v58 = vpop.f32.mrf.mxu0 }
 0x495   :  { %v1740_v36 = vpack.c.b16 %v1735_v30, %v1734_v34 }
 0x496   :  { %2099 = vmatmul.msk.bf16.gmra.mxu0 %vm396_vm1, %v2251_v15 }
 0x498   :  { %v1526_v18 = vpop.f32.mrf.mxu3 }
 0x499   :  { %v1561_v20 = vpack.c.bf16 %v1526_v18, %v1526_v18 }
 0x49b   :  { %v1736_v60 = vunpack.c.l.b16 %v1561_v20  ;;  %v1608_v50 = vpop.f32.mrf.mxu0 }
 0x49c   :  { %v2156_v47 = vpack.c.bf16 %v1608_v50, %v1606_v58 }
 0x49e   :  { %2224 = vst [vmem:[#allocation2 + $0x10] sm:$0xff] %v2156_v47  }
 0x4a0   :  { %v1528_v24 = vpop.f32.mrf.mxu3 }
 0x4a1   :  { %v1562_v55 = vpack.c.bf16 %v1528_v24, %v1528_v24 }
 0x4a3   :  { %v1737_v27 = vunpack.c.l.b16 %v1562_v55  ;;  %v1611_v0 = vpop.f32.mrf.mxu0 }
 0x4a5   :  { %v1741_v31 = vpack.c.b16 %v1737_v27, %v1736_v60 }
 0x4a6   :  { %2100 = vmatmul.msk.bf16.gmra.mxu0 %vm396_vm1, %v2252_v32 }
 0x4a7   :  { %1750 = vmatpush.bf16.msrb.mxu1 %v1741_v31 }
 0x4ab   :  { %1751 = vmatpush.bf16.msrb.mxu1 %v1740_v36  ;;  %v1613_v62 = vpop.f32.mrf.mxu0 }
 0x4ac   :  { %v2161_v1 = vpack.c.bf16 %v1613_v62, %v1611_v0 }
 0x4ae   :  { %2225 = vst [vmem:[#allocation2 + $0x18] sm:$0xff] %v2161_v1  }
 0x4af   :  { %1752 = vmatpush.bf16.msrb.mxu1 %v1739_v17 }
 0x4b3   :  { %1753 = vmatpush.bf16.msrb.mxu1 %v1738_v38  ;;  %v1649_v42 = vpop.f32.mrf.mxu1 }
 0x4b6   :  { %2101 = vmatmul.msk.bf16.vlgmr.msrb.gmra.mxu1 %vm396_vm1, %v2253_v39 }
 0x4bb   :  { %v1651_v40 = vpop.f32.mrf.mxu1 }
 0x4bc   :  { %v2166_v19 = vpack.c.bf16 %v1651_v40, %v1649_v42 }
 0x4be   :  { %2226 = vst [vmem:[#allocation2 + $0x20] sm:$0xff] %v2166_v19  }
 0x4c3   :  { %v1654_v48 = vpop.f32.mrf.mxu1 }
 0x4c6   :  { %2102 = vmatmul.msk.bf16.gmra.mxu1 %vm396_vm1, %v2254_v9 }
 0x4cb   :  { %v1656_v46 = vpop.f32.mrf.mxu1 }
 0x4cc   :  { %v2171_v54 = vpack.c.bf16 %v1656_v46, %v1654_v48 }
 0x4ce   :  { %2227 = vst [vmem:[#allocation2 + $0x28] sm:$0xff] %v2171_v54  }
 0x4d3   :  { %v1659_v59 = vpop.f32.mrf.mxu1 }
 0x4d6   :  { %2103 = vmatmul.msk.bf16.gmra.mxu1 %vm396_vm1, %v2255_v44 }
 0x4db   :  { %v1661_v57 = vpop.f32.mrf.mxu1 }
 0x4dc   :  { %v2176_v28 = vpack.c.bf16 %v1661_v57, %v1659_v59 }
 0x4de   :  { %2228 = vst [vmem:[#allocation2 + $0x30] sm:$0xff] %v2176_v28  }
 0x4e3   :  { %v1664_v61 = vpop.f32.mrf.mxu1 }
 0x4e6   :  { %2104 = vmatmul.msk.bf16.gmra.mxu1 %vm396_vm1, %v2256_v56 }
 0x4eb   :  { %v1666_v63 = vpop.f32.mrf.mxu1 }
 0x4ec   :  { %v2181_v3 = vpack.c.bf16 %v1666_v63, %v1664_v61 }
 0x4ee   :  { %2229 = vst [vmem:[#allocation2 + $0x38] sm:$0xff] %v2181_v3  }
 0x4f3   :  { %v1702_v4 = vpop.f32.mrf.mxu0 }
 0x4fb   :  { %v1704_v49 = vpop.f32.mrf.mxu0 }
 0x4fc   :  { %v2186_v5 = vpack.c.bf16 %v1704_v49, %v1702_v4 }
 0x4fe   :  { %2230 = vst [vmem:[#allocation2 + $0x40] sm:$0xff] %v2186_v5  }
 0x503   :  { %v1707_v6 = vpop.f32.mrf.mxu0 }
 0x50b   :  { %v1709_v11 = vpop.f32.mrf.mxu0 }
 0x50c   :  { %v2191_v53 = vpack.c.bf16 %v1709_v11, %v1707_v6 }
 0x50e   :  { %2231 = vst [vmem:[#allocation2 + $0x48] sm:$0xff] %v2191_v53  }
 0x513   :  { %v1712_v7 = vpop.f32.mrf.mxu0 }
 0x51b   :  { %v1714_v51 = vpop.f32.mrf.mxu0 }
 0x51c   :  { %v2196_v10 = vpack.c.bf16 %v1714_v51, %v1712_v7 }
 0x51e   :  { %2232 = vst [vmem:[#allocation2 + $0x50] sm:$0xff] %v2196_v10  }
 0x523   :  { %v1717_v14 = vpop.f32.mrf.mxu0 }
 0x52b   :  { %v1719_v20 = vpop.f32.mrf.mxu0 }
 0x52c   :  { %v2201_v24 = vpack.c.bf16 %v1719_v20, %v1717_v14 }
 0x52e   :  { %2233 = vst [vmem:[#allocation2 + $0x58] sm:$0xff] %v2201_v24  }
 0x533   :  { %v1755_v8 = vpop.f32.mrf.mxu1 }
 0x53b   :  { %v1757_v13 = vpop.f32.mrf.mxu1 }
 0x53c   :  { %v2206_v15 = vpack.c.bf16 %v1757_v13, %v1755_v8 }
 0x53e   :  { %2234 = vst [vmem:[#allocation2 + $0x60] sm:$0xff] %v2206_v15  }
 0x543   :  { %v1760_v18 = vpop.f32.mrf.mxu1 }
 0x54b   :  { %v1762_v25 = vpop.f32.mrf.mxu1 }
 0x54c   :  { %v2211_v55 = vpack.c.bf16 %v1762_v25, %v1760_v18 }
 0x54e   :  { %2235 = vst [vmem:[#allocation2 + $0x68] sm:$0xff] %v2211_v55  }
 0x553   :  { %v1765_v26 = vpop.f32.mrf.mxu1 }
 0x55b   :  { %v1767_v60 = vpop.f32.mrf.mxu1 }
 0x55c   :  { %v2216_v27 = vpack.c.bf16 %v1767_v60, %v1765_v26 }
 0x55e   :  { %2236 = vst [vmem:[#allocation2 + $0x70] sm:$0xff] %v2216_v27  }
 0x563   :  { %v1770_v29 = vpop.f32.mrf.mxu1 }
 0x56b   :  { %v1772_v30 = vpop.f32.mrf.mxu1 }
 0x56c   :  { %v2221_v31 = vpack.c.bf16 %v1772_v30, %v1770_v29 }
 0x56e   :  { %2237 = vst [vmem:[#allocation2 + $0x78] sm:$0xff] %v2221_v31  }
 0x56f   :  { %1851 = dma.vmem_to_hbm [thread:$0]  %s1844_s15, 2048, %s1846_s18, [#allocation3], %s2284_s19, %s2284_s19, %s2285_s20  }
 0x570   :  { %2281 = dma.done.wait [#allocation3], 2048  }
 0x571   :  { %2282 = vsyncadd [#allocation3], 4294965248 }
 0x572   :  { %1856 = vsyncpa [#allocation3], 1 }

</bundles_post_ra>
